<compile_context>
chip_gen: v7x
topology: tpu7x:2x2x1
jax: 0.10.0
libtpu: 0.0.40
codegen_flags: <defaults>
</compile_context>

<pallas_src>
import jax
import jax.numpy as jnp
from jax.experimental import pallas as pl
from jax.experimental.pallas import tpu as pltpu


_NEG_BIG = -1e30  # finite pad for unused logit lanes (avoids inf-inf -> NaN)


def _head_kernel(x_ref, w1_ref, b1_ref, w2_ref, b2_ref, w3_ref, b3_ref, o_ref):
    # x_ref: (TB, 1024) row tile in its native dtype (f32 here); cast to bf16
    # in-kernel right before the first dot. Weights bf16; biases f32 (1, C).
    # Output tile is a lane-dense (TB, 128) block.
    x = x_ref[...].astype(jnp.bfloat16)
    h1 = jnp.dot(x, w1_ref[...], preferred_element_type=jnp.float32) + b1_ref[...]
    h1 = jnp.maximum(h1, 0.0)                       # drop1 = identity at eval
    h2 = jnp.dot(h1.astype(jnp.bfloat16), w2_ref[...],
                 preferred_element_type=jnp.float32) + b2_ref[...]
    h2 = jnp.maximum(h2, 0.0)                       # drop2 = identity at eval
    logits = jnp.dot(h2.astype(jnp.bfloat16), w3_ref[...],
                     preferred_element_type=jnp.float32) + b3_ref[...]
    # Numerically-stable log_softmax over the (padded) emb dimension. Padded
    # lanes sit at ~-1e30, so exp(z) == 0 there and the real lanes are exact.
    m = jnp.max(logits, axis=-1, keepdims=True)
    z = logits - m
    lse = jnp.log(jnp.sum(jnp.exp(z), axis=-1, keepdims=True))
    o_ref[...] = (z - lse).astype(o_ref.dtype)


def _round_up(n, m):
    return ((n + m - 1) // m) * m


def _fold_bn(w, b, bn_params, eps=1e-5):
    """Fold eval-mode BatchNorm1d into the preceding Linear (exact)."""
    gamma, beta, mean, var = bn_params
    scale = gamma / jnp.sqrt(var + eps)
    return w * scale[None, :], (b - mean) * scale + beta


def _pick_row_tile(B):
    """Row tile size.

    bf16 packs 16 sublanes per vreg, so round to 16. Tiny batches use a single
    tile (per-step overhead dominates); larger batches use tiles of up to 512
    rows but always >= 2 grid steps so the 'parallel' row axis can be sharded
    across v7x's two TensorCores (no-op on v5e/v6e).
    """
    B16 = _round_up(B, 16)
    if B16 <= 128:
        return B16
    return min(512, _round_up((B16 + 1) // 2, 16))


def pointconv_encoder_head(l3_points, params):
    """(B, 1024) global feature -> (B, emb_size) log-probabilities."""
    B, in_dim = l3_points.shape

    # Fold BN (eval mode) into fc1 / fc2; fc3 has no BN.
    w1, b1 = _fold_bn(params["w1"], params["b1"], params["bn1"])
    w2, b2 = _fold_bn(params["w2"], params["b2"], params["bn2"])
    w3, b3 = params["w3"], params["b3"]
    h1d, h2d, emb = w1.shape[1], w2.shape[1], w3.shape[1]

    # Lane-dense final matmul / store: pad N from emb (40) to a multiple of 128.
    # Extra weight columns are zero; extra bias lanes are a large finite
    # negative value so the padded logits vanish under log_softmax.
    n_pad = _round_up(emb, 128)
    w3p = jnp.zeros((h2d, n_pad), w3.dtype).at[:, :emb].set(w3)
    b3p = jnp.full((n_pad,), _NEG_BIG, jnp.float32).at[:emb].set(b3.astype(jnp.float32))

    # bf16 matmul weights, f32 biases added post-accumulation. Activations stay
    # in their native dtype (no wrapper-side HBM pass) and are cast in-kernel.
    w1_bf = w1.astype(jnp.bfloat16)
    w2_bf = w2.astype(jnp.bfloat16)
    w3_bf = w3p.astype(jnp.bfloat16)
    b1r = b1.reshape(1, h1d).astype(jnp.float32)
    b2r = b2.reshape(1, h2d).astype(jnp.float32)
    b3r = b3p.reshape(1, n_pad)

    TB = _pick_row_tile(B)
    grid = (pl.cdiv(B, TB),)   # ragged last tile: OOB rows masked on store

    # Tight VMEM budget from the actual buffers (keep <= 32 MiB scoped default).
    x_item = jnp.dtype(l3_points.dtype).itemsize
    vmem_bytes = (
        2 * TB * in_dim * x_item                               # x tile, 2 bufs
        + 2 * TB * n_pad * 4                                   # out tile, 2 bufs
        + 2 * (in_dim * h1d + h1d * h2d + h2d * n_pad) * 2     # bf16 weights
        + 2 * (h1d + h2d + n_pad) * 4                          # biases
        + TB * (h1d + h2d + n_pad) * 4                         # f32 intermediates
        + 4 * 1024 * 1024                                      # compiler headroom
    )
    vmem_limit = int(min(32 * 1024 * 1024, max(8 * 1024 * 1024, vmem_bytes)))

    out = pl.pallas_call(
        _head_kernel,
        out_shape=jax.ShapeDtypeStruct((B, n_pad), jnp.float32),
        grid=grid,
        in_specs=[
            # Activations: tiled rows. (If profiling at TB>=512 ever shows
            # exposed input DMA, add pipeline_mode=pl.Buffered(3) here.)
            pl.BlockSpec((TB, in_dim), lambda i: (i, 0)),
            pl.BlockSpec((in_dim, h1d), lambda i: (0, 0)),   # w1: VMEM-resident
            pl.BlockSpec((1, h1d), lambda i: (0, 0)),        # b1
            pl.BlockSpec((h1d, h2d), lambda i: (0, 0)),      # w2
            pl.BlockSpec((1, h2d), lambda i: (0, 0)),        # b2
            pl.BlockSpec((h2d, n_pad), lambda i: (0, 0)),    # w3 (lane-padded)
            pl.BlockSpec((1, n_pad), lambda i: (0, 0)),      # b3 (lane-padded)
        ],
        out_specs=pl.BlockSpec((TB, n_pad), lambda i: (i, 0)),
        compiler_params=pltpu.CompilerParams(
            dimension_semantics=("parallel",),   # megacore-shardable row tiles
            vmem_limit_bytes=vmem_limit,
        ),
    )(l3_points, w1_bf, b1r, w2_bf, b2r, w3_bf, b3r)
    return out[:, :emb]


def pointconv_encoder_forward(xyz, feat, params, l3_points=None):
    """Mirrors PointConvEncoder.forward (eval mode).

    TODO(synk): the sa1/sa2/sa3 PointConvDensitySetAbstraction path is not
    implemented (definition not provided); pass the (B, 1024) global feature
    `l3_points` directly.
    """
    del xyz, feat
    if l3_points is None:
        raise NotImplementedError("PointConvDensitySetAbstraction path not implemented")
    return pointconv_encoder_head(l3_points, params)


def init_encoder_head_params(key, emb_size=40):
    """Deterministic synthetic head params; Linear weights stored as (in, out)."""
    ks = jax.random.split(key, 14)

    def linear(kw, kb, fan_in, fan_out):
        bound = 1.0 / jnp.sqrt(fan_in)
        w = jax.random.uniform(kw, (fan_in, fan_out), jnp.float32, -bound, bound)
        b = jax.random.uniform(kb, (fan_out,), jnp.float32, -bound, bound)
        return w, b

    def bnorm(kg, kb, km, kv, c):
        gamma = jax.random.uniform(kg, (c,), jnp.float32, 0.5, 1.5)
        beta = jax.random.uniform(kb, (c,), jnp.float32, -0.1, 0.1)
        mean = jax.random.uniform(km, (c,), jnp.float32, -0.1, 0.1)
        var = jax.random.uniform(kv, (c,), jnp.float32, 0.5, 1.5)
        return gamma, beta, mean, var

    w1, b1 = linear(ks[0], ks[1], 1024, 512)
    bn1 = bnorm(ks[2], ks[3], ks[4], ks[5], 512)
    w2, b2 = linear(ks[6], ks[7], 512, 256)
    bn2 = bnorm(ks[8], ks[9], ks[10], ks[11], 256)
    w3, b3 = linear(ks[12], ks[13], 256, emb_size)
    return dict(w1=w1, b1=b1, bn1=bn1, w2=w2, b2=b2, bn2=bn2, w3=w3, b3=b3)


def _reference_bf16(x, params, eps=1e-5):
    """Same math as the kernel (folded BN, bf16 operands, f32 accumulation)."""
    w1, b1 = _fold_bn(params["w1"], params["b1"], params["bn1"], eps)
    w2, b2 = _fold_bn(params["w2"], params["b2"], params["bn2"], eps)
    w3, b3 = params["w3"], params["b3"]
    h = jnp.maximum(jnp.dot(x.astype(jnp.bfloat16), w1.astype(jnp.bfloat16),
                            preferred_element_type=jnp.float32) + b1, 0.0)
    h = jnp.maximum(jnp.dot(h.astype(jnp.bfloat16), w2.astype(jnp.bfloat16),
                            preferred_element_type=jnp.float32) + b2, 0.0)
    logits = jnp.dot(h.astype(jnp.bfloat16), w3.astype(jnp.bfloat16),
                     preferred_element_type=jnp.float32) + b3
    return jax.nn.log_softmax(logits, axis=-1)


def _reference_module_eval_f32(x, params, eps=1e-5):
    """Eval-mode module semantics in full f32 (unfolded BN, dropout = identity)."""
    def bn(y, p):
        g, b, m, v = p
        return (y - m) / jnp.sqrt(v + eps) * g + b
    h = jnp.maximum(bn(x @ params["w1"] + params["b1"], params["bn1"]), 0.0)
    h = jnp.maximum(bn(h @ params["w2"] + params["b2"], params["bn2"]), 0.0)
    logits = h @ params["w3"] + params["b3"]
    return jax.nn.log_softmax(logits, axis=-1)


if __name__ == "__main__":
    B, N_POINTS, GLOBAL_FEAT, EMB = 2, 64, 1024, 40

    key = jax.random.PRNGKey(0)
    k_xyz, k_feat, k_par = jax.random.split(key, 3)

    # Module-shaped raw input (B, 3, N); consumed only by the (unimplemented) SA path.
    xyz = jax.random.normal(k_xyz, (B, 3, N_POINTS), jnp.float32)
    # TODO(synk): synthetic stand-in for sa3's (B, 1024) global feature output.
    l3_points = jax.random.normal(k_feat, (B, GLOBAL_FEAT), jnp.float32)

    params = init_encoder_head_params(k_par, EMB)

    out = pointconv_encoder_forward(xyz, None, params, l3_points=l3_points)
    out = jax.block_until_ready(out)
    assert out.shape == (B, EMB)

    # Exact-math check (same bf16/fold choices as the kernel; lane padding is
    # numerically inert since exp(-1e30 - m) == 0).
    ref_bf16 = _reference_bf16(l3_points, params)
    assert jnp.allclose(out, ref_bf16, atol=2e-3, rtol=2e-3), "mismatch vs bf16 reference"

    # Semantic sanity check vs full-precision eval-mode module math.
    ref_f32 = _reference_module_eval_f32(l3_points, params)
    assert jnp.allclose(out, ref_f32, atol=5e-2, rtol=5e-2), "mismatch vs f32 module reference"

    print("KERNEL_OK")
</pallas_src>

<mosaic_0001>
module attributes {stable_mosaic.version = 11 : i64} {
  func.func @_head_kernel(%arg0: i32, %arg1: memref<16x1024xf32, #tpu.memory_space<vmem>>, %arg2: memref<1024x512xbf16, #tpu.memory_space<vmem>>, %arg3: memref<1x512xf32, #tpu.memory_space<vmem>>, %arg4: memref<512x256xbf16, #tpu.memory_space<vmem>>, %arg5: memref<1x256xf32, #tpu.memory_space<vmem>>, %arg6: memref<256x128xbf16, #tpu.memory_space<vmem>>, %arg7: memref<1x128xf32, #tpu.memory_space<vmem>>, %arg8: memref<16x128xf32, #tpu.memory_space<vmem>>) attributes {dimension_semantics = [#tpu.dimension_semantics<parallel>], iteration_bounds = array<i64: 1>, scalar_prefetch = 0 : i64, scratch_operands = 0 : i64, tpu.core_type = #tpu.core_type<tc>, window_params = [{transform_indices = @transform_0, window_bounds = array<i64: 16, 1024>}, {pipeline_mode = #tpu.pipeline_mode<synchronous>, transform_indices = @transform_1, window_bounds = array<i64: 1024, 512>}, {pipeline_mode = #tpu.pipeline_mode<synchronous>, transform_indices = @transform_2, window_bounds = array<i64: 1, 512>}, {pipeline_mode = #tpu.pipeline_mode<synchronous>, transform_indices = @transform_3, window_bounds = array<i64: 512, 256>}, {pipeline_mode = #tpu.pipeline_mode<synchronous>, transform_indices = @transform_4, window_bounds = array<i64: 1, 256>}, {pipeline_mode = #tpu.pipeline_mode<synchronous>, transform_indices = @transform_5, window_bounds = array<i64: 256, 128>}, {pipeline_mode = #tpu.pipeline_mode<synchronous>, transform_indices = @transform_6, window_bounds = array<i64: 1, 128>}, {transform_indices = @transform_7, window_bounds = array<i64: 16, 128>}]} {
    %c0 = arith.constant 0 : index
    %c0_0 = arith.constant 0 : index
    %0 = vector.load %arg1[%c0, %c0_0] : memref<16x1024xf32, #tpu.memory_space<vmem>>, vector<16x1024xf32>
    %1 = arith.truncf %0 : vector<16x1024xf32> to vector<16x1024xbf16>
    %c0_1 = arith.constant 0 : index
    %c0_2 = arith.constant 0 : index
    %2 = vector.load %arg2[%c0_1, %c0_2] : memref<1024x512xbf16, #tpu.memory_space<vmem>>, vector<1024x512xbf16>
    %cst = arith.constant dense<0.000000e+00> : vector<16x512xf32>
    %3 = tpu.matmul %1, %2, %cst {dimension_numbers = #tpu.dot_dimension_numbers<[1], [0], [0], [1], [0, 0, 1, 1], [], []>} : vector<16x1024xbf16>, vector<1024x512xbf16>, vector<16x512xf32> -> vector<16x512xf32>
    %c0_3 = arith.constant 0 : index
    %c0_4 = arith.constant 0 : index
    %4 = vector.load %arg3[%c0_3, %c0_4] : memref<1x512xf32, #tpu.memory_space<vmem>>, vector<1x512xf32>
    %5 = vector.broadcast %4 : vector<1x512xf32> to vector<16x512xf32>
    %6 = arith.addf %3, %5 : vector<16x512xf32>
    %cst_5 = arith.constant 0.000000e+00 : f32
    %7 = vector.broadcast %cst_5 : f32 to vector<16x512xf32>
    %8 = arith.maximumf %6, %7 : vector<16x512xf32>
    %9 = arith.truncf %8 : vector<16x512xf32> to vector<16x512xbf16>
    %c0_6 = arith.constant 0 : index
    %c0_7 = arith.constant 0 : index
    %10 = vector.load %arg4[%c0_6, %c0_7] : memref<512x256xbf16, #tpu.memory_space<vmem>>, vector<512x256xbf16>
    %cst_8 = arith.constant dense<0.000000e+00> : vector<16x256xf32>
    %11 = tpu.matmul %9, %10, %cst_8 {dimension_numbers = #tpu.dot_dimension_numbers<[1], [0], [0], [1], [0, 0, 1, 1], [], []>} : vector<16x512xbf16>, vector<512x256xbf16>, vector<16x256xf32> -> vector<16x256xf32>
    %c0_9 = arith.constant 0 : index
    %c0_10 = arith.constant 0 : index
    %12 = vector.load %arg5[%c0_9, %c0_10] : memref<1x256xf32, #tpu.memory_space<vmem>>, vector<1x256xf32>
    %13 = vector.broadcast %12 : vector<1x256xf32> to vector<16x256xf32>
    %14 = arith.addf %11, %13 : vector<16x256xf32>
    %cst_11 = arith.constant 0.000000e+00 : f32
    %15 = vector.broadcast %cst_11 : f32 to vector<16x256xf32>
    %16 = arith.maximumf %14, %15 : vector<16x256xf32>
    %17 = arith.truncf %16 : vector<16x256xf32> to vector<16x256xbf16>
    %c0_12 = arith.constant 0 : index
    %c0_13 = arith.constant 0 : index
    %18 = vector.load %arg6[%c0_12, %c0_13] : memref<256x128xbf16, #tpu.memory_space<vmem>>, vector<256x128xbf16>
    %cst_14 = arith.constant dense<0.000000e+00> : vector<16x128xf32>
    %19 = tpu.matmul %17, %18, %cst_14 {dimension_numbers = #tpu.dot_dimension_numbers<[1], [0], [0], [1], [0, 0, 1, 1], [], []>} : vector<16x256xbf16>, vector<256x128xbf16>, vector<16x128xf32> -> vector<16x128xf32>
    %c0_15 = arith.constant 0 : index
    %c0_16 = arith.constant 0 : index
    %20 = vector.load %arg7[%c0_15, %c0_16] : memref<1x128xf32, #tpu.memory_space<vmem>>, vector<1x128xf32>
    %21 = vector.broadcast %20 : vector<1x128xf32> to vector<16x128xf32>
    %22 = arith.addf %19, %21 : vector<16x128xf32>
    %cst_17 = arith.constant dense<0xFF800000> : vector<16xf32>
    %23 = vector.multi_reduction <maximumf>, %22, %cst_17 [1] : vector<16x128xf32> to vector<16xf32>
    %24 = vector.shape_cast %23 : vector<16xf32> to vector<16x1xf32>
    %25 = vector.broadcast %24 : vector<16x1xf32> to vector<16x128xf32>
    %26 = arith.subf %22, %25 : vector<16x128xf32>
    %27 = math.exp %26 : vector<16x128xf32>
    %cst_18 = arith.constant dense<0.000000e+00> : vector<16xf32>
    %28 = vector.multi_reduction <add>, %27, %cst_18 [1] : vector<16x128xf32> to vector<16xf32>
    %29 = vector.shape_cast %28 : vector<16xf32> to vector<16x1xf32>
    %30 = math.log %29 : vector<16x1xf32>
    %31 = vector.broadcast %30 : vector<16x1xf32> to vector<16x128xf32>
    %32 = arith.subf %26, %31 : vector<16x128xf32>
    %c0_19 = arith.constant 0 : index
    %c0_20 = arith.constant 0 : index
    %33 = vector.load %arg8[%c0_19, %c0_20] : memref<16x128xf32, #tpu.memory_space<vmem>>, vector<16x128xf32>
    tpu.vector_store %arg8[%c0_19, %c0_20], %32 {strides = array<i32>} : memref<16x128xf32, #tpu.memory_space<vmem>>, vector<16x128xf32>,
    return
  }
  func.func @transform_0(%arg0: i32) -> (i32, i32) {
    %c0_i32 = arith.constant 0 : i32
    %c0_i32_0 = arith.constant 0 : i32
    return %arg0, %c0_i32 : i32, i32
  }
  func.func @transform_1(%arg0: i32) -> (i32, i32) {
    %c0_i32 = arith.constant 0 : i32
    %c0_i32_0 = arith.constant 0 : i32
    %c0_i32_1 = arith.constant 0 : i32
    return %c0_i32, %c0_i32_0 : i32, i32
  }
  func.func @transform_2(%arg0: i32) -> (i32, i32) {
    %c0_i32 = arith.constant 0 : i32
    %c0_i32_0 = arith.constant 0 : i32
    %c0_i32_1 = arith.constant 0 : i32
    return %c0_i32, %c0_i32_0 : i32, i32
  }
  func.func @transform_3(%arg0: i32) -> (i32, i32) {
    %c0_i32 = arith.constant 0 : i32
    %c0_i32_0 = arith.constant 0 : i32
    %c0_i32_1 = arith.constant 0 : i32
    return %c0_i32, %c0_i32_0 : i32, i32
  }
  func.func @transform_4(%arg0: i32) -> (i32, i32) {
    %c0_i32 = arith.constant 0 : i32
    %c0_i32_0 = arith.constant 0 : i32
    %c0_i32_1 = arith.constant 0 : i32
    return %c0_i32, %c0_i32_0 : i32, i32
  }
  func.func @transform_5(%arg0: i32) -> (i32, i32) {
    %c0_i32 = arith.constant 0 : i32
    %c0_i32_0 = arith.constant 0 : i32
    %c0_i32_1 = arith.constant 0 : i32
    return %c0_i32, %c0_i32_0 : i32, i32
  }
  func.func @transform_6(%arg0: i32) -> (i32, i32) {
    %c0_i32 = arith.constant 0 : i32
    %c0_i32_0 = arith.constant 0 : i32
    %c0_i32_1 = arith.constant 0 : i32
    return %c0_i32, %c0_i32_0 : i32, i32
  }
  func.func @transform_7(%arg0: i32) -> (i32, i32) {
    %c0_i32 = arith.constant 0 : i32
    %c0_i32_0 = arith.constant 0 : i32
    return %arg0, %c0_i32 : i32, i32
  }
}

</mosaic_0001>

<bundles_post_ra>
// kernel: tpu_custom_call.1
= control target key start
LH: loop header
LB: loop body
LE: loop exit
PB: predicated region body
PF: predicated region fallthrough
CT: control target
= control target key end

     0   :  { %12 = vsyncpa [#allocation3], 0  ;;  %s4191_s0 = inlined_call_operand.hbm [shape: f32[2,1024], index: 0, kind: input, shape index: {}]   ;;  %s4192_s1 = inlined_call_operand.hbm [shape: bf16[1024,512], index: 1, kind: input, shape index: {}]   ;;  %s4193_s2 = inlined_call_operand.vmem [shape: f32[1,512], index: 2, kind: input, shape index: {}]   ;;  %s4194_s3 = inlined_call_operand.hbm [shape: bf16[512,256], index: 3, kind: input, shape index: {}]   ;;  %s4195_s4 = inlined_call_operand.vmem [shape: f32[1,256], index: 4, kind: input, shape index: {}]   ;;  %s4196_s5 = inlined_call_operand.hbm [shape: bf16[256,128], index: 5, kind: input, shape index: {}]   ;;  %s4197_s6 = inlined_call_operand.vmem [shape: f32[1,128], index: 6, kind: input, shape index: {}]   ;;  %s4198_s7 = inlined_call_operand.hbm [shape: f32[2,128], index: 7, kind: output, shape index: {}]  }
   0x1   :  { %13 = vsyncpa [#allocation6], 0 }
   0x2   :  { %14 = vsyncpa [#allocation9], 0 }
   0x3   :  { %15 = vsyncpa [#allocation4], 0 }
   0x4   :  { %20 = vsyncadd [#allocation3], 1792  ;;  %s3961_s24 = smov [#allocation5]   ;;  %s3962_s26 = smov [#allocation2]  }
   0x5   :  { %s33_s25 = sshll.u32 %s3961_s24, 4  ;;  %s21_s27 = sshll.u32 %s3962_s26, 4  ;;  %s34_s25 = int_to_ptr.vmem [resolvable:$true] %s33_s25  ;;  %s4015_s27 = int_to_ptr.vmem [resolvable:$true] %s21_s27 }
   0x6   :  { %s3843_s30 = scalar_lea.hbm %s4192_s1, 32768 }
   0x7   :  { %p3844_p0 = scmp.ne.s32.totalorder %s4192_s1, %s3843_s30  ;;  %p3847_p1 = scmp.lt.u32.totalorder %s3843_s30, %s4192_s1 }
   0x9   :  { %p3849_p2 = pnand %p3847_p1, %p3844_p0 }
   0xb   :  { %3852 = shalt.err (!%p3849_p2)
}
   0xc   :  { %s3853_s12 = scalar_lea.vmem %s34_s25, 32768  ;;  %p3858_p4 = scmp.lt.s32.totalorder %s34_s25, %s34_s25 }
   0xd   :  { %p3854_p3 = scmp.ne.s32.totalorder %s34_s25, %s3853_s12  ;;  %p3859_p5 = scmp.lt.s32.totalorder %s3853_s12, %s3853_s12 }
   0xf   :  { %p3860_p6 = por %p3859_p5, %p3858_p4 }
  0x11   :  { %p3861_p7 = pnand %p3860_p6, %p3854_p3 }
  0x13   :  { %3864 = shalt.err (!%p3861_p7)
}
  0x14   :  { %s3963_s13 = smov 256   ;;  %s3964_s14 = smov 16  }
  0x15   :  { %39 = dma.hbm_to_vmem [thread:$0]  %s4192_s1, 32768, %s34_s25, [#allocation6], %s3963_s13, %s3963_s13, %s3964_s14  }
  0x16   :  { %s3865_s19 = scalar_lea.hbm %s4191_s0, 256 }
  0x17   :  { %p3866_p8 = scmp.ne.s32.totalorder %s4191_s0, %s3865_s19  ;;  %p3869_p9 = scmp.lt.u32.totalorder %s3865_s19, %s4191_s0 }
  0x19   :  { %p3871_p10 = pnand %p3869_p9, %p3866_p8 }
  0x1b   :  { %3874 = shalt.err (!%p3871_p10)
}
  0x1c   :  { %s3875_s24 = scalar_lea.vmem %s4015_s27, 256  ;;  %s3879_s1 = scalar_lea.vmem %s4015_s27, 2048 }
  0x1d   :  { %p3876_p11 = scmp.ne.s32.totalorder %s4015_s27, %s3875_s24  ;;  %p3880_p12 = scmp.lt.s32.totalorder %s4015_s27, %s4015_s27 }
  0x1e   :  { %p3881_p13 = scmp.lt.s32.totalorder %s3879_s1, %s3875_s24 }
  0x20   :  { %p3882_p0 = por %p3881_p13, %p3880_p12 }
  0x22   :  { %p3883_p1 = pnand %p3882_p0, %p3876_p11 }
  0x24   :  { %3886 = shalt.err (!%p3883_p1)
}
  0x25   :  { %27 = dma.hbm_to_vmem [thread:$0]  %s4191_s0, 256, %s4015_s27, [#allocation3], %s3963_s13, %s3963_s13, %s3964_s14  }
  0x26   :  { %s3965_s28 = smov [#allocation7]   ;;  %s3887_s9 = scalar_lea.hbm %s4194_s3, 8192 }
  0x27   :  { %s47_s29 = sshll.u32 %s3965_s28, 4  ;;  %p3888_p2 = scmp.ne.s32.totalorder %s4194_s3, %s3887_s9  ;;  %s48_s29 = int_to_ptr.vmem [resolvable:$true] %s47_s29 }
  0x28   :  { %p3891_p3 = scmp.lt.u32.totalorder %s3887_s9, %s4194_s3 }
  0x2a   :  { %p3893_p4 = pnand %p3891_p3, %p3888_p2 }
  0x2c   :  { %3896 = shalt.err (!%p3893_p4)
}
  0x2d   :  { %s3897_s16 = scalar_lea.vmem %s48_s29, 8192  ;;  %p3902_p6 = scmp.lt.s32.totalorder %s48_s29, %s48_s29 }
  0x2e   :  { %p3898_p5 = scmp.ne.s32.totalorder %s48_s29, %s3897_s16  ;;  %p3903_p7 = scmp.lt.s32.totalorder %s3897_s16, %s3897_s16 }
  0x30   :  { %p3904_p8 = por %p3903_p7, %p3902_p6 }
  0x32   :  { %p3905_p9 = pnand %p3904_p8, %p3898_p5 }
  0x34   :  { %3908 = shalt.err (!%p3905_p9)
}
  0x35   :  { %s3966_s0 = smov 128   ;;  %s3967_s27 = smov 8  }
  0x36   :  { %53 = dma.hbm_to_vmem [thread:$0]  %s4194_s3, 8192, %s48_s29, [#allocation6], %s3966_s0, %s3966_s0, %s3967_s27  }
  0x37   :  { %s3968_s17 = smov [#allocation8]   ;;  %s3909_s21 = scalar_lea.hbm %s4196_s5, 2048 }
  0x38   :  { %s61_s18 = sshll.u32 %s3968_s17, 4  ;;  %p3910_p10 = scmp.ne.s32.totalorder %s4196_s5, %s3909_s21  ;;  %s62_s18 = int_to_ptr.vmem [resolvable:$true] %s61_s18 }
  0x39   :  { %p3913_p11 = scmp.lt.u32.totalorder %s3909_s21, %s4196_s5 }
  0x3b   :  { %p3915_p12 = pnand %p3913_p11, %p3910_p10 }
  0x3d   :  { %3918 = shalt.err (!%p3915_p12)
}
  0x3e   :  { %s3919_s25 = scalar_lea.vmem %s62_s18, 2048  ;;  %p3924_p0 = scmp.lt.s32.totalorder %s62_s18, %s62_s18 }
  0x3f   :  { %p3920_p13 = scmp.ne.s32.totalorder %s62_s18, %s3919_s25  ;;  %p3925_p1 = scmp.lt.s32.totalorder %s3919_s25, %s3919_s25 }
  0x41   :  { %p3926_p2 = por %p3925_p1, %p3924_p0 }
  0x43   :  { %p3927_p3 = pnand %p3926_p2, %p3920_p13 }
  0x45   :  { %3930 = shalt.err (!%p3927_p3)
}
  0x46   :  { %s3969_s3 = smov 64   ;;  %s3970_s26 = smov 4  }
  0x47   :  { %67 = dma.hbm_to_vmem [thread:$0]  %s4196_s5, 2048, %s62_s18, [#allocation9], %s3969_s3, %s3969_s3, %s3970_s26  }
  0x48   :  { %3953 = dma.done.wait [#allocation3], 2048  }
  0x49   :  { %3954 = vsyncadd [#allocation3], 4294965248 }
  0x4a   :  { %3955 = dma.done.wait [#allocation6], 40960  }
  0x4b   :  { %3956 = vsyncadd [#allocation6], 4294926336 }
  0x4c   :  { %3957 = dma.done.wait [#allocation9], 2048  }
  0x4d   :  { %3958 = vsyncadd [#allocation9], 4294965248  ;;  %v3315_v0 = vld [vmem:[#allocation5 + $0x4] ss:$16 sps:$4 sm:$0xff]   ;;  %v3319_v2 = vld [vmem:[#allocation5] ss:$16 sps:$4 sm:$0xff]   ;;  %v122_v41 = vlaneseq }
  0x4e   :  { %v3317_v1 = vld [vmem:[#allocation5 + $0x204] ss:$16 sps:$4 sm:$0xff]   ;;  %1841 = vmatprep.subr.bf16.mxu1 %v3315_v0  ;;  %v3320_v3 = vld [vmem:[#allocation5 + $0x200] ss:$16 sps:$4 sm:$0xff]   ;;  %v3971_v39 = vmov 1983009808  }
  0x4f   :  { %1884 = vmatprep.subr.bf16.mxu0 %v3317_v1  ;;  %v3321_v4 = vld [vmem:[#allocation5 + $0x24] ss:$16 sps:$4 sm:$0xff]   ;;  %1842 = vmatpush1.bf16.msra.mxu1 %v3319_v2  ;;  %v3325_v6 = vld [vmem:[#allocation5 + $0x20] ss:$16 sps:$4 sm:$0xff]   ;;  %v120_v40 = vunpack.c.l.s4 %v3971_v39  ;;  %v4071_v48 = vshrl.u32 %v122_v41, 7 }
  0x50   :  { %1885 = vmatpush1.bf16.msra.mxu0 %v3320_v3  ;;  %v3323_v5 = vld [vmem:[#allocation5 + $0x224] ss:$16 sps:$4 sm:$0xff]   ;;  %1843 = vmatprep.subr.bf16.mxu1 %v3321_v4  ;;  %v3326_v7 = vld [vmem:[#allocation5 + $0x220] ss:$16 sps:$4 sm:$0xff]   ;;  %v3434_v39 = vld [vmem:[#allocation5 + $0x2c] ss:$16 sps:$4 sm:$0xff]  }
  0x51   :  { %1886 = vmatprep.subr.bf16.mxu0 %v3323_v5  ;;  %v3327_v8 = vld [vmem:[#allocation5 + $0x44] ss:$16 sps:$4 sm:$0xff]   ;;  %v3331_v10 = vld [vmem:[#allocation5 + $0x40] ss:$16 sps:$4 sm:$0xff]   ;;  %v121_v47 = vunpack.c.0.s8 %v120_v40  ;;  %v3432_v41 = vld [vmem:[#allocation5 + $0x28] ss:$16 sps:$4 sm:$0xff]  }
  0x52   :  { %v3329_v9 = vld [vmem:[#allocation5 + $0x244] ss:$16 sps:$4 sm:$0xff]   ;;  %v3332_v11 = vld [vmem:[#allocation5 + $0x240] ss:$16 sps:$4 sm:$0xff]  }
  0x53   :  { %1844 = vmatpush1.bf16.msra.mxu1 %v3325_v6  ;;  %v3333_v12 = vld [vmem:[#allocation5 + $0x64] ss:$16 sps:$4 sm:$0xff]   ;;  %v3337_v14 = vld [vmem:[#allocation5 + $0x60] ss:$16 sps:$4 sm:$0xff]   ;;  %v4074_v55 = vsub.s32 %v121_v47, %v4071_v48  ;;  %v3446_v47 = vld [vmem:[#allocation5 + $0x6c] ss:$16 sps:$4 sm:$0xff]  }
  0x54   :  { %1887 = vmatpush1.bf16.msra.mxu0 %v3326_v7  ;;  %1845 = vmatprep.subr.bf16.mxu1 %v3327_v8  ;;  %v3335_v13 = vld [vmem:[#allocation5 + $0x264] ss:$16 sps:$4 sm:$0xff]   ;;  %v3338_v15 = vld [vmem:[#allocation5 + $0x260] ss:$16 sps:$4 sm:$0xff]  }
  0x55   :  { %1888 = vmatprep.subr.bf16.mxu0 %v3329_v9  ;;  %v3339_v16 = vld [vmem:[#allocation5 + $0x84] ss:$16 sps:$4 sm:$0xff]   ;;  %v3343_v18 = vld [vmem:[#allocation5 + $0x80] ss:$16 sps:$4 sm:$0xff]  }
  0x56   :  { %v3341_v17 = vld [vmem:[#allocation5 + $0x284] ss:$16 sps:$4 sm:$0xff]   ;;  %v3344_v19 = vld [vmem:[#allocation5 + $0x280] ss:$16 sps:$4 sm:$0xff]  }
  0x57   :  { %1846 = vmatpush1.bf16.msra.mxu1 %v3331_v10  ;;  %v3345_v20 = vld [vmem:[#allocation5 + $0xa4] ss:$16 sps:$4 sm:$0xff]   ;;  %v3349_v22 = vld [vmem:[#allocation5 + $0xa0] ss:$16 sps:$4 sm:$0xff]  }
  0x58   :  { %1889 = vmatpush1.bf16.msra.mxu0 %v3332_v11  ;;  %1847 = vmatprep.subr.bf16.mxu1 %v3333_v12  ;;  %v3347_v21 = vld [vmem:[#allocation5 + $0x2a4] ss:$16 sps:$4 sm:$0xff]   ;;  %v3350_v23 = vld [vmem:[#allocation5 + $0x2a0] ss:$16 sps:$4 sm:$0xff]  }
  0x59   :  { %1890 = vmatprep.subr.bf16.mxu0 %v3335_v13  ;;  %v3351_v24 = vld [vmem:[#allocation5 + $0xc4] ss:$16 sps:$4 sm:$0xff]   ;;  %v3355_v26 = vld [vmem:[#allocation5 + $0xc0] ss:$16 sps:$4 sm:$0xff]  }
  0x5a   :  { %v3353_v25 = vld [vmem:[#allocation5 + $0x2c4] ss:$16 sps:$4 sm:$0xff]   ;;  %v3356_v27 = vld [vmem:[#allocation5 + $0x2c0] ss:$16 sps:$4 sm:$0xff]  }
  0x5b   :  { %1848 = vmatpush1.bf16.msra.mxu1 %v3337_v14  ;;  %v3357_v28 = vld [vmem:[#allocation5 + $0xe4] ss:$16 sps:$4 sm:$0xff]   ;;  %v3361_v30 = vld [vmem:[#allocation5 + $0xe0] ss:$16 sps:$4 sm:$0xff]  }
  0x5c   :  { %1891 = vmatpush1.bf16.msra.mxu0 %v3338_v15  ;;  %1849 = vmatprep.subr.bf16.mxu1 %v3339_v16  ;;  %v3359_v29 = vld [vmem:[#allocation5 + $0x2e4] ss:$16 sps:$4 sm:$0xff]   ;;  %v3362_v31 = vld [vmem:[#allocation5 + $0x2e0] ss:$16 sps:$4 sm:$0xff]  }
  0x5d   :  { %1892 = vmatprep.subr.bf16.mxu0 %v3341_v17  ;;  %v3363_v32 = vld [vmem:[#allocation5 + $0x104] ss:$16 sps:$4 sm:$0xff]   ;;  %v3367_v34 = vld [vmem:[#allocation5 + $0x100] ss:$16 sps:$4 sm:$0xff]  }
  0x5e   :  { %v3365_v33 = vld [vmem:[#allocation5 + $0x304] ss:$16 sps:$4 sm:$0xff]   ;;  %v3368_v35 = vld [vmem:[#allocation5 + $0x300] ss:$16 sps:$4 sm:$0xff]  }
  0x5f   :  { %1850 = vmatpush1.bf16.msra.mxu1 %v3343_v18  ;;  %v3369_v36 = vld [vmem:[#allocation5 + $0x124] ss:$16 sps:$4 sm:$0xff]   ;;  %v3373_v38 = vld [vmem:[#allocation5 + $0x120] ss:$16 sps:$4 sm:$0xff]  }
  0x60   :  { %1893 = vmatpush1.bf16.msra.mxu0 %v3344_v19  ;;  %1851 = vmatprep.subr.bf16.mxu1 %v3345_v20  ;;  %v3371_v37 = vld [vmem:[#allocation5 + $0x324] ss:$16 sps:$4 sm:$0xff]   ;;  %v3374_v42 = vld [vmem:[#allocation5 + $0x320] ss:$16 sps:$4 sm:$0xff]  }
  0x61   :  { %1894 = vmatprep.subr.bf16.mxu0 %v3347_v21  ;;  %v3375_v43 = vld [vmem:[#allocation5 + $0x144] ss:$16 sps:$4 sm:$0xff]   ;;  %v3379_v45 = vld [vmem:[#allocation5 + $0x140] ss:$16 sps:$4 sm:$0xff]  }
  0x62   :  { %v3377_v44 = vld [vmem:[#allocation5 + $0x344] ss:$16 sps:$4 sm:$0xff]   ;;  %v3380_v46 = vld [vmem:[#allocation5 + $0x340] ss:$16 sps:$4 sm:$0xff]  }
  0x63   :  { %1852 = vmatpush1.bf16.msra.mxu1 %v3349_v22  ;;  %v3381_v49 = vld [vmem:[#allocation5 + $0x164] ss:$16 sps:$4 sm:$0xff]   ;;  %v3385_v51 = vld [vmem:[#allocation5 + $0x160] ss:$16 sps:$4 sm:$0xff]  }
  0x64   :  { %1895 = vmatpush1.bf16.msra.mxu0 %v3350_v23  ;;  %1853 = vmatprep.subr.bf16.mxu1 %v3351_v24  ;;  %v3383_v50 = vld [vmem:[#allocation5 + $0x364] ss:$16 sps:$4 sm:$0xff]   ;;  %v3386_v52 = vld [vmem:[#allocation5 + $0x360] ss:$16 sps:$4 sm:$0xff]  }
  0x65   :  { %1896 = vmatprep.subr.bf16.mxu0 %v3353_v25  ;;  %v3387_v53 = vld [vmem:[#allocation5 + $0x184] ss:$16 sps:$4 sm:$0xff]   ;;  %v3411_v56 = vld [vmem:[#allocation2] ss:$16 sps:$4 sm:$0xff]  }
  0x66   :  { %v3389_v54 = vld [vmem:[#allocation5 + $0x384] ss:$16 sps:$4 sm:$0xff]   ;;  %v3413_v57 = vld [vmem:[#allocation2 + $0x20] ss:$16 sps:$4 sm:$0xff]   ;;  %v125_v63 = vrot.slane %v3411_v56, %v4074_v55 }
  0x67   :  { %1854 = vmatpush1.bf16.msra.mxu1 %v3355_v26  ;;  %v3391_v58 = vld [vmem:[#allocation5 + $0x180] ss:$16 sps:$4 sm:$0xff]   ;;  %v3419_v62 = vld [vmem:[#allocation2 + $0x4] ss:$16 sps:$4 sm:$0xff]   ;;  %v139_v0 = vrot.slane %v3413_v57, %v4074_v55  ;;  %v3458_v57 = vld [vmem:[#allocation5 + $0xac] ss:$16 sps:$4 sm:$0xff]  }
  0x68   :  { %1897 = vmatpush1.bf16.msra.mxu0 %v3356_v27  ;;  %1855 = vmatprep.subr.bf16.mxu1 %v3357_v28  ;;  %v3392_v59 = vld [vmem:[#allocation5 + $0x380] ss:$16 sps:$4 sm:$0xff]   ;;  %v3420_v1 = vld [vmem:[#allocation2 + $0x24] ss:$16 sps:$4 sm:$0xff]   ;;  %v132_v7 = vrot.slane %v3419_v62, %v4074_v55 }
  0x69   :  { %1898 = vmatprep.subr.bf16.mxu0 %v3359_v29  ;;  %v3415_v60 = vld [vmem:[#allocation2 + $0x40] ss:$16 sps:$4 sm:$0xff]   ;;  %v3421_v2 = vld [vmem:[#allocation2 + $0x44] ss:$16 sps:$4 sm:$0xff]   ;;  %v148_v9 = vcombine.high %v125_v63, %v139_v0  ;;  %v146_v10 = vrot.slane %v3420_v1, %v4074_v55  ;;  %v147_v28 = vcombine.low %v125_v63, %v139_v0  ;;  %v3462_v63 = vld [vmem:[#allocation5 + $0xc8] ss:$16 sps:$4 sm:$0xff]  }
  0x6a   :  { %v3417_v61 = vld [vmem:[#allocation2 + $0x60] ss:$16 sps:$4 sm:$0xff]   ;;  %v3422_v3 = vld [vmem:[#allocation2 + $0x64] ss:$16 sps:$4 sm:$0xff]   ;;  %v197_v5 = vrot.slane %v3415_v60, %v4074_v55  ;;  %v204_v12 = vrot.slane %v3421_v2, %v4074_v55  ;;  %v3470_v1 = vld [vmem:[#allocation5 + $0xec] ss:$16 sps:$4 sm:$0xff]  }
  0x6b   :  { %1856 = vmatpush1.bf16.msra.mxu1 %v3361_v30  ;;  %v3393_v4 = vld [vmem:[#allocation5 + $0x1a4] ss:$16 sps:$4 sm:$0xff]   ;;  %v211_v6 = vrot.slane %v3417_v61, %v4074_v55  ;;  %v218_v13 = vrot.slane %v3422_v3, %v4074_v55  ;;  %v3397_v14 = vld [vmem:[#allocation5 + $0x1a0] ss:$16 sps:$4 sm:$0xff]   ;;  %v150_v16 = vcombine.high %v132_v7, %v146_v10  ;;  %v149_v30 = vcombine.low %v132_v7, %v146_v10  ;;  %v3464_v61 = vld [vmem:[#allocation5 + $0xcc] ss:$16 sps:$4 sm:$0xff]  }
  0x6c   :  { %1899 = vmatpush1.bf16.msra.mxu0 %v3362_v31  ;;  %1857 = vmatprep.subr.bf16.mxu1 %v3363_v32  ;;  %v3395_v8 = vld [vmem:[#allocation5 + $0x3a4] ss:$16 sps:$4 sm:$0xff]   ;;  %v3398_v15 = vld [vmem:[#allocation5 + $0x3a0] ss:$16 sps:$4 sm:$0xff]   ;;  %v3468_v3 = vld [vmem:[#allocation5 + $0xe8] ss:$16 sps:$4 sm:$0xff]  }
  0x6d   :  { %1900 = vmatprep.subr.bf16.mxu0 %v3365_v33  ;;  %v220_v11 = vcombine.high %v197_v5, %v211_v6  ;;  %v3399_v17 = vld [vmem:[#allocation5 + $0x1c4] ss:$16 sps:$4 sm:$0xff]   ;;  %v222_v19 = vcombine.high %v204_v12, %v218_v13  ;;  %v3403_v22 = vld [vmem:[#allocation5 + $0x1c0] ss:$16 sps:$4 sm:$0xff]   ;;  %v219_v29 = vcombine.low %v197_v5, %v211_v6  ;;  %v221_v31 = vcombine.low %v204_v12, %v218_v13  ;;  %v3428_v33 = vld [vmem:[#allocation5 + $0xc] ss:$16 sps:$4 sm:$0xff]  }
  0x6e   :  { %v3401_v20 = vld [vmem:[#allocation5 + $0x3c4] ss:$16 sps:$4 sm:$0xff]   ;;  %v3404_v23 = vld [vmem:[#allocation5 + $0x3c0] ss:$16 sps:$4 sm:$0xff]   ;;  %v3476_v5 = vld [vmem:[#allocation5 + $0x10c] ss:$16 sps:$4 sm:$0xff]  }
  0x6f   :  { %1858 = vmatpush1.bf16.msra.mxu1 %v3367_v34  ;;  %v276_v18 = vpack.c.bf16 %v220_v11, %v148_v9  ;;  %v4084_v21 = vpack.c.bf16 %v222_v19, %v150_v16  ;;  %v3405_v24 = vld [vmem:[#allocation5 + $0x1e4] ss:$16 sps:$4 sm:$0xff]   ;;  %v3409_v26 = vld [vmem:[#allocation5 + $0x1e0] ss:$16 sps:$4 sm:$0xff]   ;;  %v4087_v34 = vpack.c.bf16 %v219_v29, %v147_v28  ;;  %v3519_v6 = vld [vmem:[#allocation2 + $0x8] ss:$16 sps:$4 sm:$0xff]  }
  0x70   :  { %1901 = vmatpush1.bf16.msra.mxu0 %v3368_v35  ;;  %1859 = vmatprep.subr.bf16.mxu1 %v3369_v36  ;;  %v3407_v25 = vld [vmem:[#allocation5 + $0x3e4] ss:$16 sps:$4 sm:$0xff]   ;;  %v3410_v27 = vld [vmem:[#allocation5 + $0x3e0] ss:$16 sps:$4 sm:$0xff]   ;;  %v3426_v36 = vld [vmem:[#allocation5 + $0x8] ss:$16 sps:$4 sm:$0xff]   ;;  %v4094_v12 = vrot.slane %v3519_v6, %v4074_v55 }
  0x71   :  { %1902 = vmatprep.subr.bf16.mxu0 %v3371_v37  ;;  %1873 = vmatprep.mubr.bf16.mxu1 %v276_v18  ;;  %v3425_v32 = vld [vmem:[#allocation5 + $0x404] ss:$16 sps:$4 sm:$0xff]   ;;  %v3423_v35 = vld [vmem:[#allocation5 + $0x400] ss:$16 sps:$4 sm:$0xff]   ;;  %v4089_v37 = vpack.c.bf16 %v221_v31, %v149_v30  ;;  %v3521_v7 = vld [vmem:[#allocation2 + $0x28] ss:$16 sps:$4 sm:$0xff]  }
  0x72   :  { %1916 = vmatprep.mubr.bf16.mxu0 %v4084_v21  ;;  %v3429_v40 = vld [vmem:[#allocation5 + $0x420] ss:$16 sps:$4 sm:$0xff]   ;;  %v3455_v56 = vld [vmem:[#allocation5 + $0x4a4] ss:$16 sps:$4 sm:$0xff]   ;;  %v3525_v9 = vld [vmem:[#allocation2 + $0x68] ss:$16 sps:$4 sm:$0xff]   ;;  %v4097_v13 = vrot.slane %v3521_v7, %v4074_v55 }
  0x73   :  { %1860 = vmatpush1.bf16.msra.mxu1 %v3373_v38  ;;  %v3431_v38 = vld [vmem:[#allocation5 + $0x424] ss:$16 sps:$4 sm:$0xff]   ;;  %v3459_v62 = vld [vmem:[#allocation5 + $0x4c0] ss:$16 sps:$4 sm:$0xff]   ;;  %v3474_v11 = vld [vmem:[#allocation5 + $0x108] ss:$16 sps:$4 sm:$0xff]   ;;  %v4103_v16 = vrot.slane %v3525_v9, %v4074_v55 }
  0x74   :  { %1903 = vmatpush1.bf16.msra.mxu0 %v3374_v42  ;;  %1861 = vmatprep.subr.bf16.mxu1 %v3375_v43  ;;  %v3437_v42 = vld [vmem:[#allocation5 + $0x444] ss:$16 sps:$4 sm:$0xff]   ;;  %v3440_v43 = vld [vmem:[#allocation5 + $0x4c] ss:$16 sps:$4 sm:$0xff]   ;;  %v3465_v2 = vld [vmem:[#allocation5 + $0x4e0] ss:$16 sps:$4 sm:$0xff]  }
  0x75   :  { %1904 = vmatprep.subr.bf16.mxu0 %v3377_v44  ;;  %v3435_v44 = vld [vmem:[#allocation5 + $0x440] ss:$16 sps:$4 sm:$0xff]   ;;  %v3461_v60 = vld [vmem:[#allocation5 + $0x4c4] ss:$16 sps:$4 sm:$0xff]   ;;  %v3494_v29 = vld [vmem:[#allocation5 + $0x16c] ss:$16 sps:$4 sm:$0xff]  }
  0x76   :  { %v3467_v0 = vld [vmem:[#allocation5 + $0x4e4] ss:$16 sps:$4 sm:$0xff]   ;;  %v3471_v10 = vld [vmem:[#allocation5 + $0x500] ss:$16 sps:$4 sm:$0xff]   ;;  %v3492_v31 = vld [vmem:[#allocation5 + $0x168] ss:$16 sps:$4 sm:$0xff]  }
  0x77   :  { %1862 = vmatpush1.bf16.msra.mxu1 %v3379_v45  ;;  %v3438_v45 = vld [vmem:[#allocation5 + $0x48] ss:$16 sps:$4 sm:$0xff]   ;;  %v3491_v28 = vld [vmem:[#allocation5 + $0x564] ss:$16 sps:$4 sm:$0xff]   ;;  %v3489_v30 = vld [vmem:[#allocation5 + $0x560] ss:$16 sps:$4 sm:$0xff]  }
  0x78   :  { %1905 = vmatpush1.bf16.msra.mxu0 %v3380_v46  ;;  %1863 = vmatprep.subr.bf16.mxu1 %v3381_v49  ;;  %v3443_v46 = vld [vmem:[#allocation5 + $0x464] ss:$16 sps:$4 sm:$0xff]   ;;  %v3441_v49 = vld [vmem:[#allocation5 + $0x460] ss:$16 sps:$4 sm:$0xff]   ;;  %v3625_v6 = vld [vmem:[#allocation2 + $0x4c] ss:$16 sps:$4 sm:$0xff]  }
  0x79   :  { %1906 = vmatprep.subr.bf16.mxu0 %v3383_v50  ;;  %v3444_v50 = vld [vmem:[#allocation5 + $0x68] ss:$16 sps:$4 sm:$0xff]   ;;  %v3626_v7 = vld [vmem:[#allocation2 + $0x6c] ss:$16 sps:$4 sm:$0xff]  }
  0x7a   :  { %v3548_v9 = vld [vmem:[#allocation5 + $0x268] ss:$16 sps:$4 sm:$0xff]  }
  0x7b   :  { %1864 = vmatpush1.bf16.msra.mxu1 %v3385_v51  ;;  %v3449_v51 = vld [vmem:[#allocation5 + $0x484] ss:$16 sps:$4 sm:$0xff]  }
  0x7c   :  { %1907 = vmatpush1.bf16.msra.mxu0 %v3386_v52  ;;  %1865 = vmatprep.subr.bf16.mxu1 %v3387_v53  ;;  %v3452_v52 = vld [vmem:[#allocation5 + $0x8c] ss:$16 sps:$4 sm:$0xff]   ;;  %v3447_v53 = vld [vmem:[#allocation5 + $0x480] ss:$16 sps:$4 sm:$0xff]  }
  0x7d   :  { %1908 = vmatprep.subr.bf16.mxu0 %v3389_v54  ;;  %v3450_v54 = vld [vmem:[#allocation5 + $0x88] ss:$16 sps:$4 sm:$0xff]  }
  0x7f   :  { %1866 = vmatpush1.bf16.msra.mxu1 %v3391_v58  ;;  %v3453_v58 = vld [vmem:[#allocation5 + $0x4a0] ss:$16 sps:$4 sm:$0xff]  }
  0x80   :  { %1909 = vmatpush1.bf16.msra.mxu0 %v3392_v59  ;;  %1867 = vmatprep.subr.bf16.mxu1 %v3393_v4  ;;  %v3456_v59 = vld [vmem:[#allocation5 + $0xa8] ss:$16 sps:$4 sm:$0xff]   ;;  %v3473_v4 = vld [vmem:[#allocation5 + $0x504] ss:$16 sps:$4 sm:$0xff]  }
  0x81   :  { %1910 = vmatprep.subr.bf16.mxu0 %v3395_v8  ;;  %v3523_v8 = vld [vmem:[#allocation2 + $0x48] ss:$16 sps:$4 sm:$0xff]  }
  0x83   :  { %1868 = vmatpush1.bf16.msra.mxu1 %v3397_v14  ;;  %v3479_v14 = vld [vmem:[#allocation5 + $0x524] ss:$16 sps:$4 sm:$0xff]  }
  0x84   :  { %1911 = vmatpush1.bf16.msra.mxu0 %v3398_v15  ;;  %1869 = vmatprep.subr.bf16.mxu1 %v3399_v17  ;;  %v4100_v15 = vrot.slane %v3523_v8, %v4074_v55  ;;  %v3482_v17 = vld [vmem:[#allocation5 + $0x12c] ss:$16 sps:$4 sm:$0xff]   ;;  %v3545_v8 = vld [vmem:[#allocation5 + $0x660] ss:$16 sps:$4 sm:$0xff]  }
  0x85   :  { %1912 = vmatprep.subr.bf16.mxu0 %v3401_v20  ;;  %v3477_v20 = vld [vmem:[#allocation5 + $0x520] ss:$16 sps:$4 sm:$0xff]  }
  0x86   :  { %v256_v19 = vcombine.high %v4100_v15, %v4103_v16 }
  0x87   :  { %1870 = vmatpush1.bf16.msra.mxu1 %v3403_v22  ;;  %v3480_v22 = vld [vmem:[#allocation5 + $0x128] ss:$16 sps:$4 sm:$0xff]  }
  0x88   :  { %1913 = vmatpush1.bf16.msra.mxu0 %v3404_v23  ;;  %1871 = vmatprep.subr.bf16.mxu1 %v3405_v24  ;;  %v3485_v23 = vld [vmem:[#allocation5 + $0x544] ss:$16 sps:$4 sm:$0xff]  }
  0x89   :  { %1914 = vmatprep.subr.bf16.mxu0 %v3407_v25  ;;  %v3488_v25 = vld [vmem:[#allocation5 + $0x14c] ss:$16 sps:$4 sm:$0xff]  }
  0x8b   :  { %1872 = vmatpush1.bf16.msra.mxu1 %v3409_v26  ;;  %v3483_v26 = vld [vmem:[#allocation5 + $0x540] ss:$16 sps:$4 sm:$0xff]  }
  0x8c   :  { %1915 = vmatpush1.bf16.msra.mxu0 %v3410_v27  ;;  %2013 = vmatprep.subr.bf16.mxu1 %v3428_v33  ;;  %v3486_v27 = vld [vmem:[#allocation5 + $0x148] ss:$16 sps:$4 sm:$0xff]   ;;  %v3500_v33 = vld [vmem:[#allocation5 + $0x18c] ss:$16 sps:$4 sm:$0xff]  }
  0x8d   :  { %1927 = vmatprep.subr.bf16.mxu0 %v3425_v32  ;;  %v3497_v32 = vld [vmem:[#allocation5 + $0x584] ss:$16 sps:$4 sm:$0xff]  }
  0x8e   :  { %1874 = vmatmul.mubr.bf16.vlgmr.msra.gmra.mrb[0].mxu1 %v4087_v34 }
  0x8f   :  { %1917 = vmatmul.mubr.bf16.vlgmr.msra.gmra.mrb[0].mxu0 %v4089_v37  ;;  %2014 = vmatpush1.bf16.msra.mxu1 %v3426_v36  ;;  %v3498_v36 = vld [vmem:[#allocation5 + $0x188] ss:$16 sps:$4 sm:$0xff]  }
  0x90   :  { %1928 = vmatpush1.bf16.msra.mxu0 %v3423_v35  ;;  %2015 = vmatprep.subr.bf16.mxu1 %v3434_v39  ;;  %v3495_v35 = vld [vmem:[#allocation5 + $0x580] ss:$16 sps:$4 sm:$0xff]   ;;  %v3506_v39 = vld [vmem:[#allocation5 + $0x1ac] ss:$16 sps:$4 sm:$0xff]  }
  0x91   :  { %1929 = vmatprep.subr.bf16.mxu0 %v3431_v38  ;;  %2045 = vmatprep.mubr.bf16.mxu1 %v276_v18  ;;  %v184_v18 = vcombine.high %v4094_v12, %v4097_v13  ;;  %v3503_v38 = vld [vmem:[#allocation5 + $0x5a4] ss:$16 sps:$4 sm:$0xff]  }
  0x93   :  { %2016 = vmatpush1.bf16.msra.mxu1 %v3432_v41  ;;  %v4109_v24 = vpack.c.bf16 %v256_v19, %v184_v18  ;;  %v3504_v41 = vld [vmem:[#allocation5 + $0x1a8] ss:$16 sps:$4 sm:$0xff]   ;;  %v3559_v19 = vld [vmem:[#allocation5 + $0x6a4] ss:$16 sps:$4 sm:$0xff]  }
  0x94   :  { %1930 = vmatpush1.bf16.msra.mxu0 %v3429_v40  ;;  %2017 = vmatprep.subr.bf16.mxu1 %v3440_v43  ;;  %v3501_v40 = vld [vmem:[#allocation5 + $0x5a0] ss:$16 sps:$4 sm:$0xff]   ;;  %v3512_v43 = vld [vmem:[#allocation5 + $0x1cc] ss:$16 sps:$4 sm:$0xff]   ;;  %v3554_v18 = vld [vmem:[#allocation5 + $0x288] ss:$16 sps:$4 sm:$0xff]  }
  0x95   :  { %1931 = vmatprep.subr.bf16.mxu0 %v3437_v42  ;;  %1959 = vmatprep.mubr.bf16.mxu0 %v4109_v24  ;;  %v3509_v42 = vld [vmem:[#allocation5 + $0x5c4] ss:$16 sps:$4 sm:$0xff]  }
  0x97   :  { %2018 = vmatpush1.bf16.msra.mxu1 %v3438_v45  ;;  %v3510_v45 = vld [vmem:[#allocation5 + $0x1c8] ss:$16 sps:$4 sm:$0xff]  }
  0x98   :  { %1932 = vmatpush1.bf16.msra.mxu0 %v3435_v44  ;;  %2019 = vmatprep.subr.bf16.mxu1 %v3446_v47  ;;  %v3507_v44 = vld [vmem:[#allocation5 + $0x5c0] ss:$16 sps:$4 sm:$0xff]   ;;  %v3518_v47 = vld [vmem:[#allocation5 + $0x1ec] ss:$16 sps:$4 sm:$0xff]  }
  0x99   :  { %1933 = vmatprep.subr.bf16.mxu0 %v3443_v46  ;;  %v3515_v46 = vld [vmem:[#allocation5 + $0x5e4] ss:$16 sps:$4 sm:$0xff]  }
  0x9b   :  { %2020 = vmatpush1.bf16.msra.mxu1 %v3444_v50  ;;  %v3516_v50 = vld [vmem:[#allocation5 + $0x1e8] ss:$16 sps:$4 sm:$0xff]  }
  0x9c   :  { %1934 = vmatpush1.bf16.msra.mxu0 %v3441_v49  ;;  %2021 = vmatprep.subr.bf16.mxu1 %v3452_v52  ;;  %v3513_v49 = vld [vmem:[#allocation5 + $0x5e0] ss:$16 sps:$4 sm:$0xff]   ;;  %v255_v52 = vcombine.low %v4100_v15, %v4103_v16 }
  0x9d   :  { %1935 = vmatprep.subr.bf16.mxu0 %v3449_v51  ;;  %v183_v51 = vcombine.low %v4094_v12, %v4097_v13  ;;  %v4128_v12 = vrot.slane %v3625_v6, %v4074_v55  ;;  %v4131_v13 = vrot.slane %v3626_v7, %v4074_v55  ;;  %v3620_v6 = vld [vmem:[#allocation5 + $0x3e8] ss:$16 sps:$4 sm:$0xff]   ;;  %v3629_v7 = vld [vmem:[#allocation5 + $0x40c] ss:$16 sps:$4 sm:$0xff]  }
  0x9f   :  { %2022 = vmatpush1.bf16.msra.mxu1 %v3450_v54  ;;  %v3532_v54 = vld [vmem:[#allocation5 + $0x20c] ss:$16 sps:$4 sm:$0xff]   ;;  %v258_v16 = vcombine.high %v4128_v12, %v4131_v13 }
  0xa0   :  { %1936 = vmatpush1.bf16.msra.mxu0 %v3447_v53  ;;  %2023 = vmatprep.subr.bf16.mxu1 %v3458_v57  ;;  %v3529_v53 = vld [vmem:[#allocation5 + $0x604] ss:$16 sps:$4 sm:$0xff]   ;;  %v3530_v57 = vld [vmem:[#allocation5 + $0x208] ss:$16 sps:$4 sm:$0xff]  }
  0xa1   :  { %1937 = vmatprep.subr.bf16.mxu0 %v3455_v56  ;;  %v3527_v56 = vld [vmem:[#allocation5 + $0x600] ss:$16 sps:$4 sm:$0xff]  }
  0xa3   :  { %2024 = vmatpush1.bf16.msra.mxu1 %v3456_v59  ;;  %v3535_v59 = vld [vmem:[#allocation5 + $0x624] ss:$16 sps:$4 sm:$0xff]  }
  0xa4   :  { %1938 = vmatpush1.bf16.msra.mxu0 %v3453_v58  ;;  %2025 = vmatprep.subr.bf16.mxu1 %v3464_v61  ;;  %v4116_v58 = vpack.c.bf16 %v255_v52, %v183_v51  ;;  %v3533_v61 = vld [vmem:[#allocation5 + $0x620] ss:$16 sps:$4 sm:$0xff]   ;;  %v3596_v51 = vld [vmem:[#allocation5 + $0x368] ss:$16 sps:$4 sm:$0xff]   ;;  %v3601_v52 = vld [vmem:[#allocation5 + $0x784] ss:$16 sps:$4 sm:$0xff]  }
  0xa5   :  { %1939 = vmatprep.subr.bf16.mxu0 %v3461_v60  ;;  %v3538_v60 = vld [vmem:[#allocation5 + $0x22c] ss:$16 sps:$4 sm:$0xff]  }
  0xa7   :  { %2026 = vmatpush1.bf16.msra.mxu1 %v3462_v63  ;;  %v3541_v63 = vld [vmem:[#allocation5 + $0x644] ss:$16 sps:$4 sm:$0xff]  }
  0xa8   :  { %1940 = vmatpush1.bf16.msra.mxu0 %v3459_v62  ;;  %2027 = vmatprep.subr.bf16.mxu1 %v3470_v1  ;;  %v3536_v62 = vld [vmem:[#allocation5 + $0x228] ss:$16 sps:$4 sm:$0xff]   ;;  %v3539_v1 = vld [vmem:[#allocation5 + $0x640] ss:$16 sps:$4 sm:$0xff]  }
  0xa9   :  { %1941 = vmatprep.subr.bf16.mxu0 %v3467_v0  ;;  %v3544_v0 = vld [vmem:[#allocation5 + $0x24c] ss:$16 sps:$4 sm:$0xff]  }
  0xab   :  { %2028 = vmatpush1.bf16.msra.mxu1 %v3468_v3  ;;  %v3547_v3 = vld [vmem:[#allocation5 + $0x664] ss:$16 sps:$4 sm:$0xff]  }
  0xac   :  { %1942 = vmatpush1.bf16.msra.mxu0 %v3465_v2  ;;  %2029 = vmatprep.subr.bf16.mxu1 %v3476_v5  ;;  %v3542_v2 = vld [vmem:[#allocation5 + $0x248] ss:$16 sps:$4 sm:$0xff]   ;;  %v3623_v5 = vld [vmem:[#allocation2 + $0xc] ss:$16 sps:$4 sm:$0xff]  }
  0xad   :  { %1943 = vmatprep.subr.bf16.mxu0 %v3473_v4  ;;  %v3550_v4 = vld [vmem:[#allocation5 + $0x26c] ss:$16 sps:$4 sm:$0xff]  }
  0xaf   :  { %2030 = vmatpush1.bf16.msra.mxu1 %v3474_v11 }
  0xb0   :  { %1944 = vmatpush1.bf16.msra.mxu0 %v3471_v10  ;;  %2031 = vmatprep.subr.bf16.mxu1 %v3482_v17  ;;  %v4122_v10 = vrot.slane %v3623_v5, %v4074_v55  ;;  %v3551_v17 = vld [vmem:[#allocation5 + $0x680] ss:$16 sps:$4 sm:$0xff]  }
  0xb1   :  { %1945 = vmatprep.subr.bf16.mxu0 %v3479_v14  ;;  %v3556_v14 = vld [vmem:[#allocation5 + $0x28c] ss:$16 sps:$4 sm:$0xff]  }
  0xb3   :  { %2032 = vmatpush1.bf16.msra.mxu1 %v3480_v22  ;;  %v3557_v22 = vld [vmem:[#allocation5 + $0x6a0] ss:$16 sps:$4 sm:$0xff]  }
  0xb4   :  { %1946 = vmatpush1.bf16.msra.mxu0 %v3477_v20  ;;  %2033 = vmatprep.subr.bf16.mxu1 %v3488_v25  ;;  %v3565_v25 = vld [vmem:[#allocation5 + $0x6c4] ss:$16 sps:$4 sm:$0xff]  }
  0xb5   :  { %1947 = vmatprep.subr.bf16.mxu0 %v3485_v23  ;;  %v3560_v23 = vld [vmem:[#allocation5 + $0x2a8] ss:$16 sps:$4 sm:$0xff]  }
  0xb7   :  { %2034 = vmatpush1.bf16.msra.mxu1 %v3486_v27  ;;  %v3563_v27 = vld [vmem:[#allocation5 + $0x6c0] ss:$16 sps:$4 sm:$0xff]  }
  0xb8   :  { %1948 = vmatpush1.bf16.msra.mxu0 %v3483_v26  ;;  %2035 = vmatprep.subr.bf16.mxu1 %v3494_v29  ;;  %v3568_v26 = vld [vmem:[#allocation5 + $0x2cc] ss:$16 sps:$4 sm:$0xff]   ;;  %v3571_v29 = vld [vmem:[#allocation5 + $0x6e4] ss:$16 sps:$4 sm:$0xff]  }
  0xb9   :  { %1949 = vmatprep.subr.bf16.mxu0 %v3491_v28  ;;  %v3566_v28 = vld [vmem:[#allocation5 + $0x2c8] ss:$16 sps:$4 sm:$0xff]  }
  0xbb   :  { %2036 = vmatpush1.bf16.msra.mxu1 %v3492_v31  ;;  %v3569_v31 = vld [vmem:[#allocation5 + $0x6e0] ss:$16 sps:$4 sm:$0xff]  }
  0xbc   :  { %1950 = vmatpush1.bf16.msra.mxu0 %v3489_v30  ;;  %2037 = vmatprep.subr.bf16.mxu1 %v3500_v33  ;;  %v3574_v30 = vld [vmem:[#allocation5 + $0x2ec] ss:$16 sps:$4 sm:$0xff]   ;;  %v3577_v33 = vld [vmem:[#allocation5 + $0x704] ss:$16 sps:$4 sm:$0xff]  }
  0xbd   :  { %1951 = vmatprep.subr.bf16.mxu0 %v3497_v32  ;;  %v3572_v32 = vld [vmem:[#allocation5 + $0x2e8] ss:$16 sps:$4 sm:$0xff]  }
  0xbf   :  { %2038 = vmatpush1.bf16.msra.mxu1 %v3498_v36  ;;  %v3575_v36 = vld [vmem:[#allocation5 + $0x700] ss:$16 sps:$4 sm:$0xff]  }
  0xc0   :  { %1952 = vmatpush1.bf16.msra.mxu0 %v3495_v35  ;;  %2039 = vmatprep.subr.bf16.mxu1 %v3506_v39  ;;  %v3580_v35 = vld [vmem:[#allocation5 + $0x30c] ss:$16 sps:$4 sm:$0xff]   ;;  %v3583_v39 = vld [vmem:[#allocation5 + $0x724] ss:$16 sps:$4 sm:$0xff]  }
  0xc1   :  { %1953 = vmatprep.subr.bf16.mxu0 %v3503_v38  ;;  %v3578_v38 = vld [vmem:[#allocation5 + $0x308] ss:$16 sps:$4 sm:$0xff]  }
  0xc3   :  { %2040 = vmatpush1.bf16.msra.mxu1 %v3504_v41  ;;  %v3581_v41 = vld [vmem:[#allocation5 + $0x720] ss:$16 sps:$4 sm:$0xff]  }
  0xc4   :  { %1954 = vmatpush1.bf16.msra.mxu0 %v3501_v40  ;;  %2041 = vmatprep.subr.bf16.mxu1 %v3512_v43  ;;  %v3586_v40 = vld [vmem:[#allocation5 + $0x32c] ss:$16 sps:$4 sm:$0xff]   ;;  %v3589_v43 = vld [vmem:[#allocation5 + $0x744] ss:$16 sps:$4 sm:$0xff]  }
  0xc5   :  { %1955 = vmatprep.subr.bf16.mxu0 %v3509_v42  ;;  %v3584_v42 = vld [vmem:[#allocation5 + $0x328] ss:$16 sps:$4 sm:$0xff]  }
  0xc7   :  { %2042 = vmatpush1.bf16.msra.mxu1 %v3510_v45  ;;  %v3587_v45 = vld [vmem:[#allocation5 + $0x740] ss:$16 sps:$4 sm:$0xff]  }
  0xc8   :  { %1956 = vmatpush1.bf16.msra.mxu0 %v3507_v44  ;;  %2043 = vmatprep.subr.bf16.mxu1 %v3518_v47  ;;  %v3592_v44 = vld [vmem:[#allocation5 + $0x34c] ss:$16 sps:$4 sm:$0xff]   ;;  %v3595_v47 = vld [vmem:[#allocation5 + $0x764] ss:$16 sps:$4 sm:$0xff]  }
  0xc9   :  { %1957 = vmatprep.subr.bf16.mxu0 %v3515_v46  ;;  %v3590_v46 = vld [vmem:[#allocation5 + $0x348] ss:$16 sps:$4 sm:$0xff]  }
  0xcb   :  { %2044 = vmatpush1.bf16.msra.mxu1 %v3516_v50  ;;  %v3593_v50 = vld [vmem:[#allocation5 + $0x760] ss:$16 sps:$4 sm:$0xff]  }
  0xcc   :  { %1958 = vmatpush1.bf16.msra.mxu0 %v3513_v49  ;;  %2056 = vmatprep.subr.bf16.mxu1 %v3532_v54  ;;  %v3598_v49 = vld [vmem:[#allocation5 + $0x36c] ss:$16 sps:$4 sm:$0xff]   ;;  %v3599_v54 = vld [vmem:[#allocation5 + $0x780] ss:$16 sps:$4 sm:$0xff]  }
  0xcd   :  { %1970 = vmatprep.subr.bf16.mxu0 %v3529_v53  ;;  %v3604_v53 = vld [vmem:[#allocation5 + $0x38c] ss:$16 sps:$4 sm:$0xff]  }
  0xce   :  { %2046 = vmatmul.mubr.bf16.vlgmr.msra.gmra.mrb[4].mxu1 %v4087_v34  ;;  %v3624_v34 = vld [vmem:[#allocation2 + $0x2c] ss:$16 sps:$4 sm:$0xff]  }
  0xcf   :  { %1960 = vmatmul.mubr.bf16.vlgmr.msra.gmra.mrb[0].mxu0 %v4116_v58  ;;  %2057 = vmatpush1.bf16.msra.mxu1 %v3530_v57  ;;  %v4125_v11 = vrot.slane %v3624_v34, %v4074_v55  ;;  %v3562_v55 = vld [vmem:[#allocation5 + $0x2ac] ss:$16 sps:$4 sm:$0xff]   ;;  %v3607_v57 = vld [vmem:[#allocation5 + $0x7a4] ss:$16 sps:$4 sm:$0xff]   ;;  %v257_v34 = vcombine.low %v4128_v12, %v4131_v13  ;;  %v3630_v12 = vld [vmem:[#allocation5 + $0x428] ss:$16 sps:$4 sm:$0xff]  }
  0xd0   :  { %1971 = vmatpush1.bf16.msra.mxu0 %v3527_v56  ;;  %2058 = vmatprep.subr.bf16.mxu1 %v3538_v60  ;;  %v3602_v56 = vld [vmem:[#allocation5 + $0x388] ss:$16 sps:$4 sm:$0xff]   ;;  %v3605_v60 = vld [vmem:[#allocation5 + $0x7a0] ss:$16 sps:$4 sm:$0xff]   ;;  %v3728_v13 = vld [vmem:[#allocation7 + $0x14] ss:$8 sps:$4 sm:$0xff]  }
  0xd1   :  { %1972 = vmatprep.subr.bf16.mxu0 %v3535_v59  ;;  %2088 = vmatprep.mubr.bf16.mxu1 %v4084_v21  ;;  %v3553_v21 = vld [vmem:[#allocation5 + $0x684] ss:$16 sps:$4 sm:$0xff]   ;;  %v186_v15 = vcombine.high %v4122_v10, %v4125_v11  ;;  %v3610_v59 = vld [vmem:[#allocation5 + $0x3ac] ss:$16 sps:$4 sm:$0xff]   ;;  %v185_v5 = vcombine.low %v4122_v10, %v4125_v11  ;;  %v3723_v10 = vld [vmem:[#allocation7] ss:$8 sps:$4 sm:$0xff]  }
  0xd2   :  { %v3725_v11 = vld [vmem:[#allocation7 + $0x4] ss:$8 sps:$4 sm:$0xff]  }
  0xd3   :  { %2059 = vmatpush1.bf16.msra.mxu1 %v3536_v62  ;;  %v4137_v20 = vpack.c.bf16 %v258_v16, %v186_v15  ;;  %v3613_v62 = vld [vmem:[#allocation5 + $0x7c4] ss:$16 sps:$4 sm:$0xff]   ;;  %v3726_v15 = vld [vmem:[#allocation7 + $0x10] ss:$8 sps:$4 sm:$0xff]  }
  0xd4   :  { %1973 = vmatpush1.bf16.msra.mxu0 %v3533_v61  ;;  %2060 = vmatprep.subr.bf16.mxu1 %v3544_v0  ;;  %v3608_v61 = vld [vmem:[#allocation5 + $0x3a8] ss:$16 sps:$4 sm:$0xff]   ;;  %v3611_v0 = vld [vmem:[#allocation5 + $0x7c0] ss:$16 sps:$4 sm:$0xff]   ;;  %v3731_v16 = vld [vmem:[#allocation7 + $0x24] ss:$8 sps:$4 sm:$0xff]  }
  0xd5   :  { %1974 = vmatprep.subr.bf16.mxu0 %v3541_v63  ;;  %2002 = vmatprep.mubr.bf16.mxu0 %v4137_v20  ;;  %v3616_v63 = vld [vmem:[#allocation5 + $0x3cc] ss:$16 sps:$4 sm:$0xff]  }
  0xd7   :  { %2061 = vmatpush1.bf16.msra.mxu1 %v3542_v2  ;;  %v3619_v2 = vld [vmem:[#allocation5 + $0x7e4] ss:$16 sps:$4 sm:$0xff]  }
  0xd8   :  { %1975 = vmatpush1.bf16.msra.mxu0 %v3539_v1  ;;  %2062 = vmatprep.subr.bf16.mxu1 %v3550_v4  ;;  %v3614_v1 = vld [vmem:[#allocation5 + $0x3c8] ss:$16 sps:$4 sm:$0xff]   ;;  %v3617_v4 = vld [vmem:[#allocation5 + $0x7e0] ss:$16 sps:$4 sm:$0xff]  }
  0xd9   :  { %1976 = vmatprep.subr.bf16.mxu0 %v3547_v3  ;;  %v3622_v3 = vld [vmem:[#allocation5 + $0x3ec] ss:$16 sps:$4 sm:$0xff]  }
  0xdb   :  { %2063 = vmatpush1.bf16.msra.mxu1 %v3548_v9  ;;  %v4144_v9 = vpack.c.bf16 %v257_v34, %v185_v5  ;;  %v3669_v5 = vld [vmem:[#allocation5 + $0x5c8] ss:$16 sps:$4 sm:$0xff]   ;;  %v3674_v34 = vld [vmem:[#allocation5 + $0x5ec] ss:$16 sps:$4 sm:$0xff]  }
  0xdc   :  { %1977 = vmatpush1.bf16.msra.mxu0 %v3545_v8  ;;  %2064 = vmatprep.subr.bf16.mxu1 %v3556_v14  ;;  %v3627_v8 = vld [vmem:[#allocation5 + $0x408] ss:$16 sps:$4 sm:$0xff]   ;;  %v3635_v14 = vld [vmem:[#allocation5 + $0x44c] ss:$16 sps:$4 sm:$0xff]  }
  0xdd   :  { %1978 = vmatprep.subr.bf16.mxu0 %v3553_v21  ;;  %v3632_v21 = vld [vmem:[#allocation5 + $0x42c] ss:$16 sps:$4 sm:$0xff]  }
  0xdf   :  { %2065 = vmatpush1.bf16.msra.mxu1 %v3554_v18  ;;  %v3638_v18 = vld [vmem:[#allocation5 + $0x46c] ss:$16 sps:$4 sm:$0xff]  }
  0xe0   :  { %1979 = vmatpush1.bf16.msra.mxu0 %v3551_v17  ;;  %2066 = vmatprep.subr.bf16.mxu1 %v3562_v55  ;;  %v3633_v17 = vld [vmem:[#allocation5 + $0x448] ss:$16 sps:$4 sm:$0xff]   ;;  %v3641_v55 = vld [vmem:[#allocation5 + $0x48c] ss:$16 sps:$4 sm:$0xff]  }
  0xe1   :  { %1980 = vmatprep.subr.bf16.mxu0 %v3559_v19  ;;  %v3636_v19 = vld [vmem:[#allocation5 + $0x468] ss:$16 sps:$4 sm:$0xff]  }
  0xe3   :  { %2067 = vmatpush1.bf16.msra.mxu1 %v3560_v23  ;;  %v3737_v23 = vld [vmem:[#allocation7 + $0x44] ss:$8 sps:$4 sm:$0xff]  }
  0xe4   :  { %1981 = vmatpush1.bf16.msra.mxu0 %v3557_v22  ;;  %2068 = vmatprep.subr.bf16.mxu1 %v3568_v26  ;;  %v3734_v22 = vld [vmem:[#allocation7 + $0x34] ss:$8 sps:$4 sm:$0xff]  }
  0xe5   :  { %1982 = vmatprep.subr.bf16.mxu0 %v3565_v25  ;;  %v3639_v25 = vld [vmem:[#allocation5 + $0x488] ss:$16 sps:$4 sm:$0xff]   ;;  %v3644_v26 = vld [vmem:[#allocation5 + $0x4ac] ss:$16 sps:$4 sm:$0xff]  }
  0xe7   :  { %2069 = vmatpush1.bf16.msra.mxu1 %v3566_v28  ;;  %v3740_v28 = vld [vmem:[#allocation7 + $0x54] ss:$8 sps:$4 sm:$0xff]  }
  0xe8   :  { %1983 = vmatpush1.bf16.msra.mxu0 %v3563_v27  ;;  %2070 = vmatprep.subr.bf16.mxu1 %v3574_v30  ;;  %v3735_v27 = vld [vmem:[#allocation7 + $0x40] ss:$8 sps:$4 sm:$0xff]   ;;  %v3647_v30 = vld [vmem:[#allocation5 + $0x4cc] ss:$16 sps:$4 sm:$0xff]  }
  0xe9   :  { %1984 = vmatprep.subr.bf16.mxu0 %v3571_v29  ;;  %v3642_v29 = vld [vmem:[#allocation5 + $0x4a8] ss:$16 sps:$4 sm:$0xff]  }
  0xeb   :  { %2071 = vmatpush1.bf16.msra.mxu1 %v3572_v32  ;;  %v3743_v32 = vld [vmem:[#allocation7 + $0x64] ss:$8 sps:$4 sm:$0xff]  }
  0xec   :  { %1985 = vmatpush1.bf16.msra.mxu0 %v3569_v31  ;;  %2072 = vmatprep.subr.bf16.mxu1 %v3580_v35  ;;  %v3738_v31 = vld [vmem:[#allocation7 + $0x50] ss:$8 sps:$4 sm:$0xff]   ;;  %v3650_v35 = vld [vmem:[#allocation5 + $0x4ec] ss:$16 sps:$4 sm:$0xff]  }
  0xed   :  { %1986 = vmatprep.subr.bf16.mxu0 %v3577_v33  ;;  %v3645_v33 = vld [vmem:[#allocation5 + $0x4c8] ss:$16 sps:$4 sm:$0xff]  }
  0xef   :  { %2073 = vmatpush1.bf16.msra.mxu1 %v3578_v38  ;;  %v3746_v38 = vld [vmem:[#allocation7 + $0x74] ss:$8 sps:$4 sm:$0xff]  }
  0xf0   :  { %1987 = vmatpush1.bf16.msra.mxu0 %v3575_v36  ;;  %2074 = vmatprep.subr.bf16.mxu1 %v3586_v40  ;;  %v3741_v36 = vld [vmem:[#allocation7 + $0x60] ss:$8 sps:$4 sm:$0xff]   ;;  %v3653_v40 = vld [vmem:[#allocation5 + $0x50c] ss:$16 sps:$4 sm:$0xff]  }
  0xf1   :  { %1988 = vmatprep.subr.bf16.mxu0 %v3583_v39  ;;  %v3648_v39 = vld [vmem:[#allocation5 + $0x4e8] ss:$16 sps:$4 sm:$0xff]  }
  0xf3   :  { %2075 = vmatpush1.bf16.msra.mxu1 %v3584_v42  ;;  %v3749_v42 = vld [vmem:[#allocation7 + $0x84] ss:$8 sps:$4 sm:$0xff]  }
  0xf4   :  { %1989 = vmatpush1.bf16.msra.mxu0 %v3581_v41  ;;  %2076 = vmatprep.subr.bf16.mxu1 %v3592_v44  ;;  %v3744_v41 = vld [vmem:[#allocation7 + $0x70] ss:$8 sps:$4 sm:$0xff]   ;;  %v3656_v44 = vld [vmem:[#allocation5 + $0x52c] ss:$16 sps:$4 sm:$0xff]  }
  0xf5   :  { %1990 = vmatprep.subr.bf16.mxu0 %v3589_v43  ;;  %v3651_v43 = vld [vmem:[#allocation5 + $0x508] ss:$16 sps:$4 sm:$0xff]  }
  0xf7   :  { %2077 = vmatpush1.bf16.msra.mxu1 %v3590_v46  ;;  %v3752_v46 = vld [vmem:[#allocation7 + $0x94] ss:$8 sps:$4 sm:$0xff]  }
  0xf8   :  { %1991 = vmatpush1.bf16.msra.mxu0 %v3587_v45  ;;  %2078 = vmatprep.subr.bf16.mxu1 %v3598_v49  ;;  %v3747_v45 = vld [vmem:[#allocation7 + $0x80] ss:$8 sps:$4 sm:$0xff]   ;;  %v3659_v49 = vld [vmem:[#allocation5 + $0x54c] ss:$16 sps:$4 sm:$0xff]  }
  0xf9   :  { %1992 = vmatprep.subr.bf16.mxu0 %v3595_v47  ;;  %v3654_v47 = vld [vmem:[#allocation5 + $0x528] ss:$16 sps:$4 sm:$0xff]  }
  0xfb   :  { %2079 = vmatpush1.bf16.msra.mxu1 %v3596_v51  ;;  %v3755_v51 = vld [vmem:[#allocation7 + $0xa4] ss:$8 sps:$4 sm:$0xff]  }
  0xfc   :  { %1993 = vmatpush1.bf16.msra.mxu0 %v3593_v50  ;;  %2080 = vmatprep.subr.bf16.mxu1 %v3604_v53  ;;  %v3750_v50 = vld [vmem:[#allocation7 + $0x90] ss:$8 sps:$4 sm:$0xff]   ;;  %v3662_v53 = vld [vmem:[#allocation5 + $0x56c] ss:$16 sps:$4 sm:$0xff]  }
  0xfd   :  { %1994 = vmatprep.subr.bf16.mxu0 %v3601_v52  ;;  %v3657_v52 = vld [vmem:[#allocation5 + $0x548] ss:$16 sps:$4 sm:$0xff]  }
  0xff   :  { %2081 = vmatpush1.bf16.msra.mxu1 %v3602_v56  ;;  %v3758_v56 = vld [vmem:[#allocation7 + $0xb4] ss:$8 sps:$4 sm:$0xff]  }
 0x100   :  { %1995 = vmatpush1.bf16.msra.mxu0 %v3599_v54  ;;  %2082 = vmatprep.subr.bf16.mxu1 %v3610_v59  ;;  %v3753_v54 = vld [vmem:[#allocation7 + $0xa0] ss:$8 sps:$4 sm:$0xff]   ;;  %v3665_v59 = vld [vmem:[#allocation5 + $0x58c] ss:$16 sps:$4 sm:$0xff]  }
 0x101   :  { %1996 = vmatprep.subr.bf16.mxu0 %v3607_v57  ;;  %v3660_v57 = vld [vmem:[#allocation5 + $0x568] ss:$16 sps:$4 sm:$0xff]  }
 0x103   :  { %2083 = vmatpush1.bf16.msra.mxu1 %v3608_v61  ;;  %v3761_v61 = vld [vmem:[#allocation7 + $0xc4] ss:$8 sps:$4 sm:$0xff]  }
 0x104   :  { %1997 = vmatpush1.bf16.msra.mxu0 %v3605_v60  ;;  %2084 = vmatprep.subr.bf16.mxu1 %v3616_v63  ;;  %v3756_v60 = vld [vmem:[#allocation7 + $0xb0] ss:$8 sps:$4 sm:$0xff]   ;;  %v3668_v63 = vld [vmem:[#allocation5 + $0x5ac] ss:$16 sps:$4 sm:$0xff]  }
 0x105   :  { %1998 = vmatprep.subr.bf16.mxu0 %v3613_v62  ;;  %v3663_v62 = vld [vmem:[#allocation5 + $0x588] ss:$16 sps:$4 sm:$0xff]  }
 0x107   :  { %2085 = vmatpush1.bf16.msra.mxu1 %v3614_v1  ;;  %v3764_v1 = vld [vmem:[#allocation7 + $0xd4] ss:$8 sps:$4 sm:$0xff]  }
 0x108   :  { %1999 = vmatpush1.bf16.msra.mxu0 %v3611_v0  ;;  %2086 = vmatprep.subr.bf16.mxu1 %v3622_v3  ;;  %v3759_v0 = vld [vmem:[#allocation7 + $0xc0] ss:$8 sps:$4 sm:$0xff]   ;;  %v3671_v3 = vld [vmem:[#allocation5 + $0x5cc] ss:$16 sps:$4 sm:$0xff]  }
 0x109   :  { %2000 = vmatprep.subr.bf16.mxu0 %v3619_v2  ;;  %v3666_v2 = vld [vmem:[#allocation5 + $0x5a8] ss:$16 sps:$4 sm:$0xff]  }
 0x10b   :  { %2087 = vmatpush1.bf16.msra.mxu1 %v3620_v6  ;;  %v3672_v6 = vld [vmem:[#allocation5 + $0x5e8] ss:$16 sps:$4 sm:$0xff]  }
 0x10c   :  { %2001 = vmatpush1.bf16.msra.mxu0 %v3617_v4  ;;  %2099 = vmatprep.subr.bf16.mxu1 %v3629_v7  ;;  %v3762_v4 = vld [vmem:[#allocation7 + $0xd0] ss:$8 sps:$4 sm:$0xff]   ;;  %v3677_v7 = vld [vmem:[#allocation5 + $0x60c] ss:$16 sps:$4 sm:$0xff]  }
 0x10d   :  { %2593 = vmatprep.subr.bf16.mxu0 %v3725_v11  ;;  %v3683_v11 = vld [vmem:[#allocation5 + $0x64c] ss:$16 sps:$4 sm:$0xff]  }
 0x10e   :  { %2089 = vmatmul.mubr.bf16.vlgmr.msra.gmra.mrb[4].mxu1 %v4089_v37  ;;  %v3729_v37 = vld [vmem:[#allocation7 + $0x20] ss:$8 sps:$4 sm:$0xff]  }
 0x10f   :  { %2003 = vmatmul.mubr.bf16.vlgmr.msra.gmra.mrb[0].mxu0 %v4144_v9  ;;  %2100 = vmatpush1.bf16.msra.mxu1 %v3627_v8  ;;  %v3675_v8 = vld [vmem:[#allocation5 + $0x608] ss:$16 sps:$4 sm:$0xff]  }
 0x110   :  { %2131 = vmatprep.mubr.bf16.mxu1 %v4109_v24  ;;  %2101 = vmatprep.subr.bf16.mxu1 %v3632_v21  ;;  %v3732_v24 = vld [vmem:[#allocation7 + $0x30] ss:$8 sps:$4 sm:$0xff]   ;;  %v3680_v21 = vld [vmem:[#allocation5 + $0x62c] ss:$16 sps:$4 sm:$0xff]  }
 0x111   :  { %2594 = vmatpush1.bf16.msra.mxu0 %v3723_v10  ;;  %v3678_v10 = vld [vmem:[#allocation5 + $0x628] ss:$16 sps:$4 sm:$0xff]  }
 0x112   :  { %2595 = vmatprep.subr.bf16.mxu0 %v3728_v13  ;;  %v3686_v13 = vld [vmem:[#allocation5 + $0x66c] ss:$16 sps:$4 sm:$0xff]  }
 0x113   :  { %2102 = vmatpush1.bf16.msra.mxu1 %v3630_v12  ;;  %v3681_v12 = vld [vmem:[#allocation5 + $0x648] ss:$16 sps:$4 sm:$0xff]  }
 0x114   :  { %2103 = vmatprep.subr.bf16.mxu1 %v3635_v14  ;;  %v3684_v14 = vld [vmem:[#allocation5 + $0x668] ss:$16 sps:$4 sm:$0xff]  }
 0x115   :  { %2596 = vmatpush1.bf16.msra.mxu0 %v3726_v15  ;;  %v3689_v15 = vld [vmem:[#allocation5 + $0x68c] ss:$16 sps:$4 sm:$0xff]  }
 0x116   :  { %2597 = vmatprep.subr.bf16.mxu0 %v3731_v16  ;;  %v3687_v16 = vld [vmem:[#allocation5 + $0x688] ss:$16 sps:$4 sm:$0xff]  }
 0x117   :  { %2104 = vmatpush1.bf16.msra.mxu1 %v3633_v17  ;;  %v3692_v17 = vld [vmem:[#allocation5 + $0x6ac] ss:$16 sps:$4 sm:$0xff]  }
 0x118   :  { %2105 = vmatprep.subr.bf16.mxu1 %v3638_v18  ;;  %v3695_v18 = vld [vmem:[#allocation5 + $0x6cc] ss:$16 sps:$4 sm:$0xff]  }
 0x119   :  { %2598 = vmatpush1.bf16.msra.mxu0 %v3729_v37 }
 0x11a   :  { %2599 = vmatprep.subr.bf16.mxu0 %v3734_v22  ;;  %v3693_v22 = vld [vmem:[#allocation5 + $0x6c8] ss:$16 sps:$4 sm:$0xff]  }
 0x11b   :  { %2106 = vmatpush1.bf16.msra.mxu1 %v3636_v19  ;;  %v3767_v19 = vld [vmem:[#allocation7 + $0xe4] ss:$8 sps:$4 sm:$0xff]  }
 0x11c   :  { %2107 = vmatprep.subr.bf16.mxu1 %v3641_v55 }
 0x11d   :  { %2600 = vmatpush1.bf16.msra.mxu0 %v3732_v24  ;;  %v3765_v24 = vld [vmem:[#allocation7 + $0xe0] ss:$8 sps:$4 sm:$0xff]  }
 0x11e   :  { %2601 = vmatprep.subr.bf16.mxu0 %v3737_v23 }
 0x11f   :  { %2108 = vmatpush1.bf16.msra.mxu1 %v3639_v25  ;;  %v3698_v25 = vld [vmem:[#allocation5 + $0x6ec] ss:$16 sps:$4 sm:$0xff]  }
 0x120   :  { %2109 = vmatprep.subr.bf16.mxu1 %v3644_v26  ;;  %v3770_v26 = vld [vmem:[#allocation7 + $0xf4] ss:$8 sps:$4 sm:$0xff]  }
 0x121   :  { %2602 = vmatpush1.bf16.msra.mxu0 %v3735_v27  ;;  %v3696_v27 = vld [vmem:[#allocation5 + $0x6e8] ss:$16 sps:$4 sm:$0xff]  }
 0x122   :  { %2603 = vmatprep.subr.bf16.mxu0 %v3740_v28  ;;  %v3768_v28 = vld [vmem:[#allocation7 + $0xf0] ss:$8 sps:$4 sm:$0xff]  }
 0x123   :  { %2110 = vmatpush1.bf16.msra.mxu1 %v3642_v29  ;;  %v3701_v29 = vld [vmem:[#allocation5 + $0x70c] ss:$16 sps:$4 sm:$0xff]  }
 0x124   :  { %2111 = vmatprep.subr.bf16.mxu1 %v3647_v30  ;;  %v3699_v30 = vld [vmem:[#allocation5 + $0x708] ss:$16 sps:$4 sm:$0xff]  }
 0x125   :  { %2604 = vmatpush1.bf16.msra.mxu0 %v3738_v31  ;;  %v3704_v31 = vld [vmem:[#allocation5 + $0x72c] ss:$16 sps:$4 sm:$0xff]  }
 0x126   :  { %2605 = vmatprep.subr.bf16.mxu0 %v3743_v32  ;;  %v3773_v32 = vld [vmem:[#allocation7 + $0x104] ss:$8 sps:$4 sm:$0xff]  }
 0x127   :  { %2112 = vmatpush1.bf16.msra.mxu1 %v3645_v33  ;;  %v3702_v33 = vld [vmem:[#allocation5 + $0x728] ss:$16 sps:$4 sm:$0xff]  }
 0x128   :  { %2113 = vmatprep.subr.bf16.mxu1 %v3650_v35  ;;  %v3707_v35 = vld [vmem:[#allocation5 + $0x74c] ss:$16 sps:$4 sm:$0xff]  }
 0x129   :  { %2606 = vmatpush1.bf16.msra.mxu0 %v3741_v36  ;;  %v3705_v36 = vld [vmem:[#allocation5 + $0x748] ss:$16 sps:$4 sm:$0xff]  }
 0x12a   :  { %2607 = vmatprep.subr.bf16.mxu0 %v3746_v38  ;;  %v3710_v38 = vld [vmem:[#allocation5 + $0x76c] ss:$16 sps:$4 sm:$0xff]  }
 0x12b   :  { %2114 = vmatpush1.bf16.msra.mxu1 %v3648_v39  ;;  %v3708_v39 = vld [vmem:[#allocation5 + $0x768] ss:$16 sps:$4 sm:$0xff]  }
 0x12c   :  { %2115 = vmatprep.subr.bf16.mxu1 %v3653_v40  ;;  %v3713_v40 = vld [vmem:[#allocation5 + $0x78c] ss:$16 sps:$4 sm:$0xff]  }
 0x12d   :  { %2608 = vmatpush1.bf16.msra.mxu0 %v3744_v41  ;;  %v3711_v41 = vld [vmem:[#allocation5 + $0x788] ss:$16 sps:$4 sm:$0xff]  }
 0x12e   :  { %2609 = vmatprep.subr.bf16.mxu0 %v3749_v42  ;;  %v3716_v42 = vld [vmem:[#allocation5 + $0x7ac] ss:$16 sps:$4 sm:$0xff]  }
 0x12f   :  { %2116 = vmatpush1.bf16.msra.mxu1 %v3651_v43  ;;  %v3714_v43 = vld [vmem:[#allocation5 + $0x7a8] ss:$16 sps:$4 sm:$0xff]  }
 0x130   :  { %2117 = vmatprep.subr.bf16.mxu1 %v3656_v44  ;;  %v3719_v44 = vld [vmem:[#allocation5 + $0x7cc] ss:$16 sps:$4 sm:$0xff]  }
 0x131   :  { %2610 = vmatpush1.bf16.msra.mxu0 %v3747_v45  ;;  %v3717_v45 = vld [vmem:[#allocation5 + $0x7c8] ss:$16 sps:$4 sm:$0xff]  }
 0x132   :  { %2611 = vmatprep.subr.bf16.mxu0 %v3752_v46  ;;  %v3722_v46 = vld [vmem:[#allocation5 + $0x7ec] ss:$16 sps:$4 sm:$0xff]  }
 0x133   :  { %2118 = vmatpush1.bf16.msra.mxu1 %v3654_v47  ;;  %v3720_v47 = vld [vmem:[#allocation5 + $0x7e8] ss:$16 sps:$4 sm:$0xff]  }
 0x134   :  { %2119 = vmatprep.subr.bf16.mxu1 %v3659_v49  ;;  %v543_v49 = vsub.s32 0, %v4071_v48 }
 0x135   :  { %2612 = vmatpush1.bf16.msra.mxu0 %v3750_v50  ;;  %v4156_v50 = vld [vmem:[%s4193_s2] sm:$0xf] }
 0x136   :  { %2613 = vmatprep.subr.bf16.mxu0 %v3755_v51  ;;  %v547_v51 = vsub.s32 1, %v4071_v48 }
 0x137   :  { %2120 = vmatpush1.bf16.msra.mxu1 %v3657_v52  ;;  %v544_v52 = vrot.slane %v4156_v50, %v543_v49 }
 0x138   :  { %2121 = vmatprep.subr.bf16.mxu1 %v3662_v53  ;;  %v548_v53 = vrot.slane %v4156_v50, %v547_v51 }
 0x139   :  { %2614 = vmatpush1.bf16.msra.mxu0 %v3753_v54 }
 0x13a   :  { %2615 = vmatprep.subr.bf16.mxu0 %v3758_v56 }
 0x13b   :  { %2122 = vmatpush1.bf16.msra.mxu1 %v3660_v57 }
 0x13c   :  { %2123 = vmatprep.subr.bf16.mxu1 %v3665_v59 }
 0x13d   :  { %2616 = vmatpush1.bf16.msra.mxu0 %v3756_v60 }
 0x13e   :  { %2617 = vmatprep.subr.bf16.mxu0 %v3761_v61 }
 0x13f   :  { %2124 = vmatpush1.bf16.msra.mxu1 %v3663_v62 }
 0x140   :  { %2125 = vmatprep.subr.bf16.mxu1 %v3668_v63 }
 0x141   :  { %2618 = vmatpush1.bf16.msra.mxu0 %v3759_v0 }
 0x142   :  { %2619 = vmatprep.subr.bf16.mxu0 %v3764_v1 }
 0x143   :  { %2126 = vmatpush1.bf16.msra.mxu1 %v3666_v2 }
 0x144   :  { %2127 = vmatprep.subr.bf16.mxu1 %v3671_v3 }
 0x145   :  { %2620 = vmatpush1.bf16.msra.mxu0 %v3762_v4 }
 0x146   :  { %2621 = vmatprep.subr.bf16.mxu0 %v3767_v19  ;;  %v3785_v19 = vld [vmem:[#allocation7 + $0x144] ss:$8 sps:$4 sm:$0xff]  }
 0x147   :  { %2128 = vmatpush1.bf16.msra.mxu1 %v3669_v5 }
 0x148   :  { %2129 = vmatprep.subr.bf16.mxu1 %v3674_v34 }
 0x149   :  { %2622 = vmatpush1.bf16.msra.mxu0 %v3765_v24  ;;  %v3783_v24 = vld [vmem:[#allocation7 + $0x140] ss:$8 sps:$4 sm:$0xff]  }
 0x14a   :  { %2623 = vmatprep.subr.bf16.mxu0 %v3770_v26  ;;  %v3829_v26 = vld [vmem:[#allocation8 + $0x68] sm:$0xff]  }
 0x14b   :  { %2130 = vmatpush1.bf16.msra.mxu1 %v3672_v6 }
 0x14c   :  { %2142 = vmatprep.subr.bf16.mxu1 %v3677_v7 }
 0x14d   :  { %2624 = vmatpush1.bf16.msra.mxu0 %v3768_v28  ;;  %v3791_v28 = vld [vmem:[#allocation7 + $0x164] ss:$8 sps:$4 sm:$0xff]  }
 0x14e   :  { %2132 = vmatmul.mubr.bf16.vlgmr.msra.gmra.mrb[4].mxu1 %v4116_v58  ;;  %v3690_v58 = vld [vmem:[#allocation5 + $0x6a8] ss:$16 sps:$4 sm:$0xff]   ;;  %2636 = vmatprep.subr.bf16.mxu0 %v3773_v32  ;;  %v3797_v32 = vld [vmem:[#allocation7 + $0x184] ss:$8 sps:$4 sm:$0xff]  }
 0x14f   :  { %2143 = vmatpush1.bf16.msra.mxu1 %v3675_v8  ;;  %2174 = vmatprep.mubr.bf16.mxu1 %v4137_v20  ;;  %v3771_v8 = vld [vmem:[#allocation7 + $0x100] ss:$8 sps:$4 sm:$0xff]  }
 0x150   :  { %2144 = vmatprep.subr.bf16.mxu1 %v3680_v21  ;;  %v3776_v21 = vld [vmem:[#allocation7 + $0x114] ss:$8 sps:$4 sm:$0xff]  }
 0x153   :  { %2145 = vmatpush1.bf16.msra.mxu1 %v3678_v10  ;;  %v3819_v10 = vld [vmem:[#allocation8 + $0x40] sm:$0xff]  }
 0x154   :  { %2146 = vmatprep.subr.bf16.mxu1 %v3683_v11  ;;  %v3820_v11 = vld [vmem:[#allocation8] sm:$0xff]  }
 0x157   :  { %2147 = vmatpush1.bf16.msra.mxu1 %v3681_v12  ;;  %v3821_v12 = vld [vmem:[#allocation8 + $0x48] sm:$0xff]  }
 0x158   :  { %2148 = vmatprep.subr.bf16.mxu1 %v3686_v13  ;;  %v3774_v13 = vld [vmem:[#allocation7 + $0x110] ss:$8 sps:$4 sm:$0xff]  }
 0x15b   :  { %2149 = vmatpush1.bf16.msra.mxu1 %v3684_v14  ;;  %v3779_v14 = vld [vmem:[#allocation7 + $0x124] ss:$8 sps:$4 sm:$0xff]  }
 0x15c   :  { %2150 = vmatprep.subr.bf16.mxu1 %v3689_v15  ;;  %v3822_v15 = vld [vmem:[#allocation8 + $0x8] sm:$0xff]  }
 0x15f   :  { %2151 = vmatpush1.bf16.msra.mxu1 %v3687_v16  ;;  %v3823_v16 = vld [vmem:[#allocation8 + $0x50] sm:$0xff]  }
 0x160   :  { %2152 = vmatprep.subr.bf16.mxu1 %v3692_v17  ;;  %v3777_v17 = vld [vmem:[#allocation7 + $0x120] ss:$8 sps:$4 sm:$0xff]  }
 0x161   :  { %v1875_v37 = vpop.f32.mrb[0].mxu1 }
 0x162   :  { %v1877_v20 = vpop.f32.mrb[1].mxu1  ;;  %v1876_v54 = vadd.f32 %v1875_v37, %v544_v52  ;;  %v3825_v37 = vld [vmem:[#allocation8 + $0x58] sm:$0xff]  }
 0x163   :  { %v1879_v55 = vpop.f32.mrb[2].mxu1  ;;  %2153 = vmatpush1.bf16.msra.mxu1 %v3690_v58  ;;  %v1878_v56 = vadd.f32 %v1877_v20, %v548_v53  ;;  %v3782_v58 = vld [vmem:[#allocation7 + $0x134] ss:$8 sps:$4 sm:$0xff]   ;;  %v3780_v20 = vld [vmem:[#allocation7 + $0x130] ss:$8 sps:$4 sm:$0xff]  }
 0x164   :  { %v1881_v23 = vpop.f32.mrb[3].mxu1  ;;  %2154 = vmatprep.subr.bf16.mxu1 %v3695_v18  ;;  %v1880_v57 = vadd.f32 %v1879_v55, %v544_v52  ;;  %v3824_v18 = vld [vmem:[#allocation8 + $0x10] sm:$0xff]   ;;  %v3826_v55 = vld [vmem:[#allocation8 + $0x18] sm:$0xff]  }
 0x165   :  { %v1882_v61 = vadd.f32 %v1881_v23, %v548_v53  ;;  %v3788_v23 = vld [vmem:[#allocation7 + $0x154] ss:$8 sps:$4 sm:$0xff]   ;;  %v3816_v53 = vld [vmem:[#allocation7 + $0x1f0] ss:$8 sps:$4 sm:$0xff]  }
 0x166   :  { %v3818_v52 = vld [vmem:[#allocation7 + $0x1f4] ss:$8 sps:$4 sm:$0xff]  }
 0x167   :  { %2155 = vmatpush1.bf16.msra.mxu1 %v3693_v22  ;;  %v3827_v22 = vld [vmem:[#allocation8 + $0x60] sm:$0xff]  }
 0x168   :  { %2156 = vmatprep.subr.bf16.mxu1 %v3698_v25  ;;  %v3828_v25 = vld [vmem:[#allocation8 + $0x20] sm:$0xff]  }
 0x16b   :  { %2157 = vmatpush1.bf16.msra.mxu1 %v3696_v27  ;;  %v3786_v27 = vld [vmem:[#allocation7 + $0x150] ss:$8 sps:$4 sm:$0xff]  }
 0x16c   :  { %2158 = vmatprep.subr.bf16.mxu1 %v3701_v29  ;;  %v3789_v29 = vld [vmem:[#allocation7 + $0x160] ss:$8 sps:$4 sm:$0xff]  }
 0x16f   :  { %2159 = vmatpush1.bf16.msra.mxu1 %v3699_v30  ;;  %v3794_v30 = vld [vmem:[#allocation7 + $0x174] ss:$8 sps:$4 sm:$0xff]  }
 0x170   :  { %2160 = vmatprep.subr.bf16.mxu1 %v3704_v31  ;;  %v3792_v31 = vld [vmem:[#allocation7 + $0x170] ss:$8 sps:$4 sm:$0xff]  }
 0x173   :  { %2161 = vmatpush1.bf16.msra.mxu1 %v3702_v33  ;;  %v3795_v33 = vld [vmem:[#allocation7 + $0x180] ss:$8 sps:$4 sm:$0xff]  }
 0x174   :  { %2162 = vmatprep.subr.bf16.mxu1 %v3707_v35  ;;  %v3800_v35 = vld [vmem:[#allocation7 + $0x194] ss:$8 sps:$4 sm:$0xff]  }
 0x177   :  { %2163 = vmatpush1.bf16.msra.mxu1 %v3705_v36  ;;  %v3798_v36 = vld [vmem:[#allocation7 + $0x190] ss:$8 sps:$4 sm:$0xff]  }
 0x178   :  { %2164 = vmatprep.subr.bf16.mxu1 %v3710_v38  ;;  %v3803_v38 = vld [vmem:[#allocation7 + $0x1a4] ss:$8 sps:$4 sm:$0xff]  }
 0x17b   :  { %2165 = vmatpush1.bf16.msra.mxu1 %v3708_v39  ;;  %v3801_v39 = vld [vmem:[#allocation7 + $0x1a0] ss:$8 sps:$4 sm:$0xff]  }
 0x17c   :  { %2166 = vmatprep.subr.bf16.mxu1 %v3713_v40  ;;  %v3806_v40 = vld [vmem:[#allocation7 + $0x1b4] ss:$8 sps:$4 sm:$0xff]  }
 0x17f   :  { %2167 = vmatpush1.bf16.msra.mxu1 %v3711_v41  ;;  %v3804_v41 = vld [vmem:[#allocation7 + $0x1b0] ss:$8 sps:$4 sm:$0xff]  }
 0x180   :  { %2168 = vmatprep.subr.bf16.mxu1 %v3716_v42  ;;  %v3809_v42 = vld [vmem:[#allocation7 + $0x1c4] ss:$8 sps:$4 sm:$0xff]  }
 0x183   :  { %2169 = vmatpush1.bf16.msra.mxu1 %v3714_v43  ;;  %v3807_v43 = vld [vmem:[#allocation7 + $0x1c0] ss:$8 sps:$4 sm:$0xff]  }
 0x184   :  { %2170 = vmatprep.subr.bf16.mxu1 %v3719_v44  ;;  %v3812_v44 = vld [vmem:[#allocation7 + $0x1d4] ss:$8 sps:$4 sm:$0xff]  }
 0x187   :  { %2171 = vmatpush1.bf16.msra.mxu1 %v3717_v45  ;;  %v3810_v45 = vld [vmem:[#allocation7 + $0x1d0] ss:$8 sps:$4 sm:$0xff]  }
 0x188   :  { %2172 = vmatprep.subr.bf16.mxu1 %v3722_v46  ;;  %v3815_v46 = vld [vmem:[#allocation7 + $0x1e4] ss:$8 sps:$4 sm:$0xff]  }
 0x18b   :  { %2173 = vmatpush1.bf16.msra.mxu1 %v3720_v47  ;;  %v3813_v47 = vld [vmem:[#allocation7 + $0x1e0] ss:$8 sps:$4 sm:$0xff]  }
 0x18c   :  { %3239 = vmatprep.subr.bf16.mxu1 %v3819_v10  ;;  %v3833_v10 = vld [vmem:[#allocation8 + $0x78] sm:$0xff]  }
 0x18e   :  { %2175 = vmatmul.mubr.bf16.vlgmr.msra.gmra.mrb[4].mxu1 %v4144_v9 }
 0x18f   :  { %3240 = vmatpush3.bf16.msra.mxu1 %v3820_v11  ;;  %v3834_v11 = vld [vmem:[#allocation8 + $0x38] sm:$0xff]  }
 0x190   :  { %3241 = vmatprep.subr.bf16.mxu1 %v3821_v12  ;;  %v2261_v12 = vld [vmem:[%s4195_s4] sm:$0x3] }
 0x193   :  { %3242 = vmatpush3.bf16.msra.mxu1 %v3822_v15 }
 0x194   :  { %3243 = vmatprep.subr.bf16.mxu1 %v3823_v16 }
 0x197   :  { %3244 = vmatpush3.bf16.msra.mxu1 %v3824_v18 }
 0x198   :  { %3245 = vmatprep.subr.bf16.mxu1 %v3825_v37 }
 0x19b   :  { %3246 = vmatpush3.bf16.msra.mxu1 %v3826_v55 }
 0x19c   :  { %3247 = vmatprep.subr.bf16.mxu1 %v3827_v22 }
 0x19f   :  { %3248 = vmatpush3.bf16.msra.mxu1 %v3828_v25 }
 0x1a0   :  { %3249 = vmatprep.subr.bf16.mxu1 %v3829_v26 }
 0x1e2   :  { %v2004_v9 = vpop.f32.mrb[0].mxu0 }
 0x1e3   :  { %v3262_v59 = vadd.f32 %v2004_v9, %v1876_v54  ;;  %v2006_v60 = vpop.f32.mrb[1].mxu0  ;;  %v551_v54 = vsub.s32 2, %v4071_v48 }
 0x1e4   :  { %v3264_v62 = vadd.f32 %v2006_v60, %v1878_v56  ;;  %v2008_v63 = vpop.f32.mrb[2].mxu0  ;;  %v555_v56 = vsub.s32 3, %v4071_v48  ;;  %v3222_v48 = vld [vmem:[%s4197_s6] ss:$0 sm:$0xff] }
 0x1e5   :  { %v3266_v0 = vadd.f32 %v2008_v63, %v1880_v57  ;;  %v2010_v1 = vpop.f32.mrb[3].mxu0  ;;  %v2185_v3 = vmax.f32 %v3262_v59, 0.0  ;;  %v552_v9 = vrot.slane %v4156_v50, %v551_v54 }
 0x1e6   :  { %v3268_v2 = vadd.f32 %v2010_v1, %v1882_v61  ;;  %v2186_v5 = vmax.f32 %v3264_v62, 0.0  ;;  %v556_v57 = vrot.slane %v4156_v50, %v555_v56  ;;  %v3832_v50 = vld [vmem:[#allocation8 + $0x30] sm:$0xff]  }
 0x1e7   :  { %v2189_v4 = vmax.f32 %v3266_v0, 0.0 }
 0x1e8   :  { %v2190_v34 = vmax.f32 %v3268_v2, 0.0 }
 0x1e9   :  { %v2193_v6 = vpack.c.bf16 %v2189_v4, %v2185_v3 }
 0x1ea   :  { %v2194_v7 = vpack.c.bf16 %v2190_v34, %v2186_v5 }
 0x1ec   :  { %2625 = vmatprep.mubr.bf16.mxu0 %v2194_v7 }
 0x1ed   :  { %2626 = vmatmul.mubr.bf16.vlgmr.msra.gmra.mrb[4].mxu0 %v2193_v6 }
 0x1ee   :  { %2637 = vmatpush1.bf16.msra.mxu0 %v3771_v8  ;;  %v3830_v8 = vld [vmem:[#allocation8 + $0x28] sm:$0xff]  }
 0x1ef   :  { %2638 = vmatprep.subr.bf16.mxu0 %v3776_v21  ;;  %3250 = vmatpush3.bf16.msra.mxu1 %v3830_v8  ;;  %v3831_v21 = vld [vmem:[#allocation8 + $0x70] sm:$0xff]  }
 0x1f0   :  { %3251 = vmatprep.subr.bf16.mxu1 %v3831_v21 }
 0x1f2   :  { %2639 = vmatpush1.bf16.msra.mxu0 %v3774_v13  ;;  %v2266_v13 = vrot.slane %v2261_v12, %v543_v49 }
 0x1f3   :  { %2640 = vmatprep.subr.bf16.mxu0 %v3779_v14  ;;  %3252 = vmatpush3.bf16.msra.mxu1 %v3832_v50  ;;  %v2270_v14 = vrot.slane %v2261_v12, %v547_v51 }
 0x1f4   :  { %3253 = vmatprep.subr.bf16.mxu1 %v3833_v10 }
 0x1f6   :  { %2641 = vmatpush1.bf16.msra.mxu0 %v3777_v17 }
 0x1f7   :  { %2642 = vmatprep.subr.bf16.mxu0 %v3782_v58  ;;  %3254 = vmatpush3.bf16.msra.mxu1 %v3834_v11 }
 0x1fa   :  { %2643 = vmatpush1.bf16.msra.mxu0 %v3780_v20 }
 0x1fb   :  { %2644 = vmatprep.subr.bf16.mxu0 %v3785_v19 }
 0x1fe   :  { %2645 = vmatpush1.bf16.msra.mxu0 %v3783_v24 }
 0x1ff   :  { %2646 = vmatprep.subr.bf16.mxu0 %v3788_v23 }
 0x202   :  { %2647 = vmatpush1.bf16.msra.mxu0 %v3786_v27 }
 0x203   :  { %2648 = vmatprep.subr.bf16.mxu0 %v3791_v28 }
 0x206   :  { %2649 = vmatpush1.bf16.msra.mxu0 %v3789_v29 }
 0x207   :  { %2650 = vmatprep.subr.bf16.mxu0 %v3794_v30 }
 0x20a   :  { %2651 = vmatpush1.bf16.msra.mxu0 %v3792_v31 }
 0x20b   :  { %2652 = vmatprep.subr.bf16.mxu0 %v3797_v32 }
 0x20e   :  { %2653 = vmatpush1.bf16.msra.mxu0 %v3795_v33 }
 0x20f   :  { %2654 = vmatprep.subr.bf16.mxu0 %v3800_v35 }
 0x212   :  { %2655 = vmatpush1.bf16.msra.mxu0 %v3798_v36 }
 0x213   :  { %2656 = vmatprep.subr.bf16.mxu0 %v3803_v38 }
 0x216   :  { %2657 = vmatpush1.bf16.msra.mxu0 %v3801_v39 }
 0x217   :  { %2658 = vmatprep.subr.bf16.mxu0 %v3806_v40 }
 0x21a   :  { %2659 = vmatpush1.bf16.msra.mxu0 %v3804_v41 }
 0x21b   :  { %2660 = vmatprep.subr.bf16.mxu0 %v3809_v42 }
 0x21e   :  { %2661 = vmatpush1.bf16.msra.mxu0 %v3807_v43 }
 0x21f   :  { %2662 = vmatprep.subr.bf16.mxu0 %v3812_v44 }
 0x222   :  { %2663 = vmatpush1.bf16.msra.mxu0 %v3810_v45 }
 0x223   :  { %2664 = vmatprep.subr.bf16.mxu0 %v3815_v46 }
 0x226   :  { %2665 = vmatpush1.bf16.msra.mxu0 %v3813_v47 }
 0x227   :  { %2666 = vmatprep.subr.bf16.mxu0 %v3818_v52 }
 0x22a   :  { %2667 = vmatpush1.bf16.msra.mxu0 %v3816_v53 }
 0x261   :  { %v2176_v59 = vpop.f32.mrb[4].mxu1 }
 0x262   :  { %v3269_v60 = vadd.f32 %v2176_v59, %v552_v9  ;;  %v2178_v61 = vpop.f32.mrb[5].mxu1 }
 0x263   :  { %v3270_v62 = vadd.f32 %v2178_v61, %v556_v57  ;;  %v2180_v63 = vpop.f32.mrb[6].mxu1 }
 0x264   :  { %v3271_v0 = vadd.f32 %v2180_v63, %v552_v9  ;;  %v2182_v1 = vpop.f32.mrb[7].mxu1  ;;  %v2187_v3 = vmax.f32 %v3269_v60, 0.0 }
 0x265   :  { %v3272_v2 = vadd.f32 %v2182_v1, %v556_v57  ;;  %v2188_v5 = vmax.f32 %v3270_v62, 0.0 }
 0x266   :  { %v2191_v4 = vmax.f32 %v3271_v0, 0.0 }
 0x267   :  { %v2192_v34 = vmax.f32 %v3272_v2, 0.0 }
 0x268   :  { %v2195_v6 = vpack.c.bf16 %v2191_v4, %v2187_v3 }
 0x269   :  { %v2196_v7 = vpack.c.bf16 %v2192_v34, %v2188_v5 }
 0x26b   :  { %2668 = vmatprep.mubr.bf16.mxu0 %v2196_v7 }
 0x26c   :  { %2669 = vmatmul.mubr.bf16.vlgmr.msra.gmra.mrb[4].mxu0 %v2195_v6 }
 0x33f   :  { %v2670_v15 = vpop.f32.mrb[4].mxu0 }
 0x340   :  { %v3273_v16 = vadd.f32 %v2670_v15, %v2266_v13  ;;  %v2672_v17 = vpop.f32.mrb[5].mxu0 }
 0x341   :  { %v3274_v58 = vadd.f32 %v2672_v17, %v2270_v14  ;;  %v2674_v18 = vpop.f32.mrb[6].mxu0 }
 0x342   :  { %v3275_v37 = vadd.f32 %v2674_v18, %v2266_v13  ;;  %v2676_v20 = vpop.f32.mrb[7].mxu0  ;;  %v2679_v55 = vmax.f32 %v3273_v16, 0.0 }
 0x343   :  { %v3276_v19 = vadd.f32 %v2676_v20, %v2270_v14  ;;  %v2680_v24 = vmax.f32 %v3274_v58, 0.0 }
 0x344   :  { %v2681_v22 = vmax.f32 %v3275_v37, 0.0 }
 0x345   :  { %v2682_v23 = vmax.f32 %v3276_v19, 0.0 }
 0x346   :  { %v2683_v25 = vpack.c.bf16 %v2681_v22, %v2679_v55 }
 0x347   :  { %v2684_v26 = vpack.c.bf16 %v2682_v23, %v2680_v24 }
 0x349   :  { %2852 = vmatprep.mubr.bf16.mxu1 %v2684_v26 }
 0x34a   :  { %2853 = vmatmul.mubr.bf16.vlgmr.msra.gmra.mrb[8].mxu1 %v2683_v25 }
 0x41d   :  { %v3255_v49 = vpop.f32.mrb[8].mxu1 }
 0x41e   :  { %v3256_v27 = vpop.f32.mrb[9].mxu1 }
 0x41f   :  { %v3257_v51 = vadd.f32 %v3256_v27, %v3255_v49  ;;  %v3258_v28 = vpop.f32.mrb[10].mxu1 }
 0x420   :  { %v3259_v29 = vpop.f32.mrb[11].mxu1 }
 0x421   :  { %v3260_v30 = vadd.f32 %v3259_v29, %v3258_v28  ;;  %v2855_v31 = vadd.f32 %v3257_v51, %v3222_v48 }
 0x423   :  { %2861 = vmax.xlane.f32.xlu0 %v2855_v31  ;;  %v2858_v32 = vadd.f32 %v3260_v30, %v3222_v48 }
 0x427   :  { %2863 = vmax.xlane.f32.xlu0 %v2858_v32 }
 0x4b0   :  { %v2862_v33 = vpop.xlane.xlu0 %2861 }
 0x4b1   :  { %v2865_v35 = vsub.f32 %v2855_v31, %v2862_v33 }
 0x4b3   :  { %v2867_v36 = vmul.f32 1.442695, %v2865_v35 }
 0x4b4   :  { %v2864_v38 = vpop.xlane.xlu0 %2863 }
 0x4b5   :  { %v2866_v39 = vsub.f32 %v2858_v32, %v2864_v38  ;;  %3835 = vpow2.f32 %v2867_v36 }
 0x4b7   :  { %v2869_v40 = vmul.f32 1.442695, %v2866_v39 }
 0x4b9   :  { %3837 = vpow2.f32 %v2869_v40 }
 0x4bf   :  { %v3836_v41 = vpop.eup %3835 }
 0x4c0   :  { %2871 = vadd.xlane.f32.xlu1 %v3836_v41 }
 0x4c3   :  { %v3838_v42 = vpop.eup %3837 }
 0x4c4   :  { %2873 = vadd.xlane.f32.xlu1 %v3838_v42 }
 0x54d   :  { %v2872_v43 = vpop.xlane.xlu1 %2871 }
 0x54e   :  { %3839 = vlog2.f32 %v2872_v43 }
 0x551   :  { %v2874_v44 = vpop.xlane.xlu1 %2873 }
 0x552   :  { %3841 = vlog2.f32 %v2874_v44 }
 0x558   :  { %v3840_v45 = vpop.eup %3839 }
 0x559   :  { %v2876_v46 = vmul.f32 0.6931472, %v3840_v45 }
 0x55b   :  { %v2879_v47 = vsub.f32 %v2865_v35, %v2876_v46 }
 0x55c   :  { %v3842_v52 = vpop.eup %3841 }
 0x55d   :  { %2881 = vst [vmem:[#allocation10] sm:$0xff] %v2879_v47  ;;  %v2878_v53 = vmul.f32 0.6931472, %v3842_v52 }
 0x55f   :  { %v2880_v54 = vsub.f32 %v2866_v39, %v2878_v53 }
 0x561   :  { %2882 = vst [vmem:[#allocation10 + $0x8] sm:$0xff] %v2880_v54 }
 0x562   :  { %2887 = vsyncadd [#allocation4], 224  ;;  %s3972_s6 = smov [#allocation10]  }
 0x563   :  { %s2888_s10 = sshll.u32 %s3972_s6, 4  ;;  %s2889_s10 = int_to_ptr.vmem [resolvable:$true] %s2888_s10 }
 0x564   :  { %s3931_s11 = scalar_lea.vmem %s2889_s10, 32  ;;  %s3935_s12 = scalar_lea.vmem %s2889_s10, 256 }
 0x565   :  { %p3932_p4 = scmp.ne.s32.totalorder %s2889_s10, %s3931_s11  ;;  %p3936_p5 = scmp.lt.s32.totalorder %s2889_s10, %s2889_s10 }
 0x566   :  { %p3937_p6 = scmp.lt.s32.totalorder %s3935_s12, %s3931_s11 }
 0x568   :  { %p3938_p7 = por %p3937_p6, %p3936_p5 }
 0x56a   :  { %p3939_p8 = pnand %p3938_p7, %p3932_p4 }
 0x56c   :  { %3942 = shalt.err (!%p3939_p8)
}
 0x56d   :  { %s3943_s0 = scalar_lea.hbm %s4198_s7, 32 }
 0x56e   :  { %p3944_p9 = scmp.ne.s32.totalorder %s4198_s7, %s3943_s0  ;;  %p3947_p10 = scmp.lt.u32.totalorder %s3943_s0, %s4198_s7 }
 0x570   :  { %p3949_p11 = pnand %p3947_p10, %p3944_p9 }
 0x572   :  { %3952 = shalt.err (!%p3949_p11)
}
 0x573   :  { %s3973_s18 = smov 32   ;;  %s3974_s19 = smov 2  }
 0x574   :  { %2894 = dma.vmem_to_hbm [thread:$0]  %s2889_s10, 32, %s4198_s7, [#allocation4], %s3973_s18, %s3973_s18, %s3974_s19  }
 0x575   :  { %3959 = dma.done.wait [#allocation4], 256  }
 0x576   :  { %3960 = vsyncadd [#allocation4], 4294967040 }
 0x577   :  { %2898 = vsyncpa [#allocation3], 1 }
 0x578   :  { %2899 = vsyncpa [#allocation6], 1 }
 0x579   :  { %2900 = vsyncpa [#allocation9], 1 }
 0x57a   :  { %2901 = vsyncpa [#allocation4], 1 }

</bundles_post_ra>
